<compile_context>
chip_gen: v7x
topology: tpu7x:2x2x1
jax: 0.10.0
libtpu: 0.0.40
codegen_flags: <defaults>
</compile_context>

<pallas_src>
import jax
import jax.numpy as jnp
from jax import lax
from jax.experimental import pallas as pl
from jax.experimental.pallas import tpu as pltpu

# ----------------------------- model config ---------------------------------
B = 2                 # batch
C = 3                 # image channels
IMG = 16              # spatial (H = W)
PATCH = 8             # patch size
NP = (IMG // PATCH) ** 2          # num patches = 4
SEQ = NP + 1                      # +cls = 5
BT = B * SEQ                      # batch folded into tokens = 10
D = 128               # hidden size (stand-in for 1280), lane-dense
HEADS = 4
HD = D // HEADS
MLP = 4 * D
LAYERS = 2
OUT_DIM = 128         # stand-in for 1024 (wrapper hidden_size), lane-dense
PATCH_DIM = C * PATCH * PATCH
LN_EPS = 1e-6
PARAM_DTYPE = jnp.bfloat16        # ImageBind tower is cast to bfloat16


# ----------------------------- helpers ---------------------------------------
def _layernorm_f32(x_f32, g_ref, b_ref):
    """LayerNorm with f32 statistics; gamma/beta are bf16 refs."""
    mu = jnp.mean(x_f32, axis=-1, keepdims=True)
    var = jnp.mean(jnp.square(x_f32 - mu), axis=-1, keepdims=True)
    xhat = (x_f32 - mu) * lax.rsqrt(var + LN_EPS)
    return xhat * g_ref[...].astype(jnp.float32) + b_ref[...].astype(jnp.float32)


def _block_diag_bias():
    """Additive attention bias: 0 within the same image, -1e30 across images."""
    ri = lax.broadcasted_iota(jnp.int32, (BT, BT), 0)
    ci = lax.broadcasted_iota(jnp.int32, (BT, BT), 1)
    bias = jnp.full((BT, BT), -1e30, jnp.float32)
    for b in range(B):                                   # tiny static unroll
        rb = (ri >= b * SEQ) & (ri < (b + 1) * SEQ)
        cb = (ci >= b * SEQ) & (ci < (b + 1) * SEQ)
        bias = jnp.where(rb & cb, 0.0, bias)
    return bias


# ----------------------------- fused trunk kernel -----------------------------
def _trunk_kernel(patches, pw, pb, cls_tok, pos,
                  ln1g, ln1b, wqkv, bqkv, wo, bo,
                  ln2g, ln2b, w1, b1, w2, b2,
                  hg, hb, hw,
                  out_ref, acc_ref):
    layer = pl.program_id(0)

    # ---- prologue (layer 0): patch-embed + cls + pos -> VMEM activations ----
    @pl.when(layer == 0)
    def _embed():
        emb = jnp.dot(patches[...], pw[...],
                      preferred_element_type=jnp.float32)        # (B*NP, D) f32
        emb = emb + pb[...].astype(jnp.float32)
        cls_row = (cls_tok[...].astype(jnp.float32)
                   + pos[0:1, :].astype(jnp.float32))            # (1, D)
        pos_patch = pos[1:SEQ, :].astype(jnp.float32)            # (NP, D)
        for b in range(B):                                       # static, B=2
            acc_ref[pl.ds(b * SEQ, 1), :] = cls_row.astype(acc_ref.dtype)
            acc_ref[pl.ds(b * SEQ + 1, NP), :] = (
                emb[b * NP:(b + 1) * NP, :] + pos_patch).astype(acc_ref.dtype)

    # ---- one transformer encoder layer (every grid step) ----
    x = acc_ref[...]                                             # (BT, D) bf16

    # attention
    xn = _layernorm_f32(x.astype(jnp.float32), ln1g, ln1b).astype(x.dtype)
    qkv = jnp.dot(xn, wqkv[...], preferred_element_type=jnp.float32)
    qkv = qkv + bqkv[...].astype(jnp.float32)                    # (BT, 3D) f32

    bias = _block_diag_bias()                                    # (BT, BT) f32
    scale = 1.0 / (HD ** 0.5)
    wo_v = wo[...]                                               # (D, D) bf16
    attn_proj = jnp.zeros((BT, D), jnp.float32)
    for h in range(HEADS):                                       # static unroll
        qh = qkv[:, h * HD:(h + 1) * HD].astype(x.dtype)
        kh = qkv[:, D + h * HD:D + (h + 1) * HD].astype(x.dtype)
        vh = qkv[:, 2 * D + h * HD:2 * D + (h + 1) * HD].astype(x.dtype)
        s = lax.dot_general(qh, kh, (((1,), (1,)), ((), ())),
                            preferred_element_type=jnp.float32) * scale + bias
        s = s - jnp.max(s, axis=-1, keepdims=True)
        p = jnp.exp(s)
        p = p * pl.reciprocal(jnp.sum(p, axis=-1, keepdims=True), approx=True)
        oh = jnp.dot(p.astype(x.dtype), vh,
                     preferred_element_type=jnp.float32)          # (BT, HD)
        # accumulate head output directly into the output projection
        attn_proj = attn_proj + jnp.dot(oh.astype(x.dtype),
                                        wo_v[h * HD:(h + 1) * HD, :],
                                        preferred_element_type=jnp.float32)
    x = x + (attn_proj + bo[...].astype(jnp.float32)).astype(x.dtype)

    # MLP
    xn2 = _layernorm_f32(x.astype(jnp.float32), ln2g, ln2b).astype(x.dtype)
    h1 = jnp.dot(xn2, w1[...], preferred_element_type=jnp.float32)
    h1 = jax.nn.gelu(h1 + b1[...].astype(jnp.float32))           # EUP tanh path
    mlp = jnp.dot(h1.astype(x.dtype), w2[...],
                  preferred_element_type=jnp.float32)
    x = x + (mlp + b2[...].astype(jnp.float32)).astype(x.dtype)
    acc_ref[...] = x

    # ---- head (last layer): LN -> cls rows -> projection -> L2 normalize ----
    @pl.when(layer == LAYERS - 1)
    def _head():
        cls_rows = jnp.concatenate(
            [acc_ref[pl.ds(b * SEQ, 1), :] for b in range(B)], axis=0)  # (B, D)
        c = _layernorm_f32(cls_rows.astype(jnp.float32), hg, hb)
        proj = jnp.dot(c.astype(cls_rows.dtype), hw[...],
                       preferred_element_type=jnp.float32)       # (B, OUT_DIM)
        inv = lax.rsqrt(jnp.maximum(
            jnp.sum(proj * proj, axis=-1, keepdims=True), 1e-24))
        out_ref[...] = (proj * inv).astype(out_ref.dtype)


def imagebind_trunk(patches, params):
    """One pallas_call over grid=(LAYERS,); activations stay in VMEM scratch."""
    def full(*shape):
        return pl.BlockSpec(shape, lambda l, _n=len(shape): (0,) * _n)

    def lspec(r, c):
        return pl.BlockSpec((None, r, c), lambda l: (l, 0, 0))

    return pl.pallas_call(
        _trunk_kernel,
        out_shape=jax.ShapeDtypeStruct((B, OUT_DIM), PARAM_DTYPE),
        grid=(LAYERS,),
        in_specs=[
            full(B * NP, PATCH_DIM),                 # patches
            full(PATCH_DIM, D), full(1, D),          # patch-embed w, b
            full(1, D), full(SEQ, D),                # cls token, pos embed
            lspec(1, D), lspec(1, D),                # ln1 gamma/beta
            lspec(D, 3 * D), lspec(1, 3 * D),        # fused qkv w, b
            lspec(D, D), lspec(1, D),                # attn out proj w, b
            lspec(1, D), lspec(1, D),                # ln2 gamma/beta
            lspec(D, MLP), lspec(1, MLP),            # mlp fc1 w, b
            lspec(MLP, D), lspec(1, D),              # mlp fc2 w, b
            full(1, D), full(1, D),                  # head LN gamma/beta
            full(D, OUT_DIM),                        # head projection
        ],
        out_specs=pl.BlockSpec((B, OUT_DIM), lambda l: (0, 0)),
        scratch_shapes=[pltpu.VMEM((BT, D), PARAM_DTYPE)],   # resident activations
        compiler_params=pltpu.CompilerParams(
            dimension_semantics=("arbitrary",)),
    )(
        patches,
        params["patch_w"], params["patch_b"], params["cls"], params["pos"],
        params["ln1_g"], params["ln1_b"], params["wqkv"], params["bqkv"],
        params["wo"], params["bo"], params["ln2_g"], params["ln2_b"],
        params["w1"], params["b1"], params["w2"], params["b2"],
        params["head_ln_g"], params["head_ln_b"], params["head_w"],
    )


# ----------------------------- parameters -------------------------------------
def init_params(key):
    ks = iter(jax.random.split(key, 32))
    n = lambda shape, s=0.02: (s * jax.random.normal(next(ks), shape, jnp.float32)
                               ).astype(PARAM_DTYPE)
    L = LAYERS
    return {
        "patch_w": n((PATCH_DIM, D)),
        "patch_b": n((1, D)),
        "cls": n((1, D)),
        "pos": n((SEQ, D)),
        # per-layer weights stacked along a leading LAYERS axis
        "ln1_g": jnp.ones((L, 1, D), PARAM_DTYPE),
        "ln1_b": jnp.zeros((L, 1, D), PARAM_DTYPE),
        "wqkv": n((L, D, 3 * D)),
        "bqkv": n((L, 1, 3 * D)),
        "wo": n((L, D, D)),
        "bo": n((L, 1, D)),
        "ln2_g": jnp.ones((L, 1, D), PARAM_DTYPE),
        "ln2_b": jnp.zeros((L, 1, D), PARAM_DTYPE),
        "w1": n((L, D, MLP)),
        "b1": n((L, 1, MLP)),
        "w2": n((L, MLP, D)),
        "b2": n((L, 1, D)),
        # head
        "head_ln_g": jnp.ones((1, D), PARAM_DTYPE),
        "head_ln_b": jnp.zeros((1, D), PARAM_DTYPE),
        "head_w": n((D, OUT_DIM)),
    }


# ----------------------------- forward (wrapper) ------------------------------
def imagebind_wrapper_forward(x_nchw, params):
    """Mirrors ImageBindWrapper.forward for tensor (vision) input."""
    if isinstance(x_nchw, dict):
        # TODO(synk): audio modality path (load_and_transform_audio_data) not implemented.
        raise NotImplementedError("audio path not supported in synthetic kernel")

    x = x_nchw.astype(PARAM_DTYPE)                           # x.to(self.dtype)

    # Patchify NCHW -> (B*NP, C*PATCH*PATCH).  Pure layout glue.
    b, c, h, w = x.shape
    x = x.reshape(b, c, h // PATCH, PATCH, w // PATCH, PATCH)
    x = x.transpose(0, 2, 4, 1, 3, 5).reshape(b * NP, PATCH_DIM)

    # Fused trunk: patch-embed + cls/pos + LAYERS blocks + head, one pallas_call.
    emb = imagebind_trunk(x, params)                         # (B, OUT_DIM)

    # vision_embedding.ndim == 2  ->  unsqueeze(1)
    return emb[:, None, :]                                   # (B, 1, OUT_DIM)


# ----------------------------- main -------------------------------------------
if __name__ == "__main__":
    key = jax.random.PRNGKey(0)
    k_param, k_x = jax.random.split(key)
    params = init_params(k_param)
    x = jax.random.normal(k_x, (B, C, IMG, IMG), jnp.float32)

    fwd = jax.jit(imagebind_wrapper_forward)
    out = jax.block_until_ready(fwd(x, params))

    assert out.shape == (B, 1, OUT_DIM), out.shape
    assert out.dtype == PARAM_DTYPE, out.dtype
    print("KERNEL_OK")
</pallas_src>

<mosaic_0001>
module attributes {stable_mosaic.version = 11 : i64} {
  func.func @_trunk_kernel(%arg0: i32, %arg1: memref<8x192xbf16, #tpu.memory_space<vmem>>, %arg2: memref<192x128xbf16, #tpu.memory_space<vmem>>, %arg3: memref<1x128xbf16, #tpu.memory_space<vmem>>, %arg4: memref<1x128xbf16, #tpu.memory_space<vmem>>, %arg5: memref<5x128xbf16, #tpu.memory_space<vmem>>, %arg6: memref<1x1x128xbf16, #tpu.memory_space<vmem>>, %arg7: memref<1x1x128xbf16, #tpu.memory_space<vmem>>, %arg8: memref<1x128x384xbf16, #tpu.memory_space<vmem>>, %arg9: memref<1x1x384xbf16, #tpu.memory_space<vmem>>, %arg10: memref<1x128x128xbf16, #tpu.memory_space<vmem>>, %arg11: memref<1x1x128xbf16, #tpu.memory_space<vmem>>, %arg12: memref<1x1x128xbf16, #tpu.memory_space<vmem>>, %arg13: memref<1x1x128xbf16, #tpu.memory_space<vmem>>, %arg14: memref<1x128x512xbf16, #tpu.memory_space<vmem>>, %arg15: memref<1x1x512xbf16, #tpu.memory_space<vmem>>, %arg16: memref<1x512x128xbf16, #tpu.memory_space<vmem>>, %arg17: memref<1x1x128xbf16, #tpu.memory_space<vmem>>, %arg18: memref<1x128xbf16, #tpu.memory_space<vmem>>, %arg19: memref<1x128xbf16, #tpu.memory_space<vmem>>, %arg20: memref<128x128xbf16, #tpu.memory_space<vmem>>, %arg21: memref<2x128xbf16, #tpu.memory_space<vmem>>, %arg22: memref<10x128xbf16, #tpu.memory_space<vmem>>) attributes {dimension_semantics = [#tpu.dimension_semantics<arbitrary>], iteration_bounds = array<i64: 2>, scalar_prefetch = 0 : i64, scratch_operands = 1 : i64, tpu.core_type = #tpu.core_type<tc>, window_params = [{pipeline_mode = #tpu.pipeline_mode<synchronous>, transform_indices = @transform_0, window_bounds = array<i64: 8, 192>}, {pipeline_mode = #tpu.pipeline_mode<synchronous>, transform_indices = @transform_1, window_bounds = array<i64: 192, 128>}, {pipeline_mode = #tpu.pipeline_mode<synchronous>, transform_indices = @transform_2, window_bounds = array<i64: 1, 128>}, {pipeline_mode = #tpu.pipeline_mode<synchronous>, transform_indices = @transform_3, window_bounds = array<i64: 1, 128>}, {pipeline_mode = #tpu.pipeline_mode<synchronous>, transform_indices = @transform_4, window_bounds = array<i64: 5, 128>}, {transform_indices = @transform_5, window_bounds = array<i64: 1, 1, 128>}, {transform_indices = @transform_6, window_bounds = array<i64: 1, 1, 128>}, {transform_indices = @transform_7, window_bounds = array<i64: 1, 128, 384>}, {transform_indices = @transform_8, window_bounds = array<i64: 1, 1, 384>}, {transform_indices = @transform_9, window_bounds = array<i64: 1, 128, 128>}, {transform_indices = @transform_10, window_bounds = array<i64: 1, 1, 128>}, {transform_indices = @transform_11, window_bounds = array<i64: 1, 1, 128>}, {transform_indices = @transform_12, window_bounds = array<i64: 1, 1, 128>}, {transform_indices = @transform_13, window_bounds = array<i64: 1, 128, 512>}, {transform_indices = @transform_14, window_bounds = array<i64: 1, 1, 512>}, {transform_indices = @transform_15, window_bounds = array<i64: 1, 512, 128>}, {transform_indices = @transform_16, window_bounds = array<i64: 1, 1, 128>}, {pipeline_mode = #tpu.pipeline_mode<synchronous>, transform_indices = @transform_17, window_bounds = array<i64: 1, 128>}, {pipeline_mode = #tpu.pipeline_mode<synchronous>, transform_indices = @transform_18, window_bounds = array<i64: 1, 128>}, {pipeline_mode = #tpu.pipeline_mode<synchronous>, transform_indices = @transform_19, window_bounds = array<i64: 128, 128>}, {pipeline_mode = #tpu.pipeline_mode<synchronous>, transform_indices = @transform_20, window_bounds = array<i64: 2, 128>}]} {
    %c0_i32 = arith.constant 0 : i32
    %0 = arith.cmpi eq, %arg0, %c0_i32 : i32
    %1 = arith.extui %0 : i1 to i32
    %c0_i32_0 = arith.constant 0 : i32
    %2 = arith.cmpi ne, %1, %c0_i32_0 : i32
    scf.if %2 {
      %c0_91 = arith.constant 0 : index
      %c0_92 = arith.constant 0 : index
      %251 = vector.load %arg1[%c0_91, %c0_92] : memref<8x192xbf16, #tpu.memory_space<vmem>>, vector<8x192xbf16>
      %c0_93 = arith.constant 0 : index
      %c0_94 = arith.constant 0 : index
      %252 = vector.load %arg2[%c0_93, %c0_94] : memref<192x128xbf16, #tpu.memory_space<vmem>>, vector<192x128xbf16>
      %cst_95 = arith.constant dense<0.000000e+00> : vector<8x128xf32>
      %253 = tpu.matmul %251, %252, %cst_95 {dimension_numbers = #tpu.dot_dimension_numbers<[1], [0], [0], [1], [0, 0, 1, 1], [], []>} : vector<8x192xbf16>, vector<192x128xbf16>, vector<8x128xf32> -> vector<8x128xf32>
      %c0_96 = arith.constant 0 : index
      %c0_97 = arith.constant 0 : index
      %254 = vector.load %arg3[%c0_96, %c0_97] : memref<1x128xbf16, #tpu.memory_space<vmem>>, vector<1x128xbf16>
      %255 = arith.extf %254 : vector<1x128xbf16> to vector<1x128xf32>
      %256 = vector.broadcast %255 : vector<1x128xf32> to vector<8x128xf32>
      %257 = arith.addf %253, %256 : vector<8x128xf32>
      %c0_98 = arith.constant 0 : index
      %c0_99 = arith.constant 0 : index
      %258 = vector.load %arg4[%c0_98, %c0_99] : memref<1x128xbf16, #tpu.memory_space<vmem>>, vector<1x128xbf16>
      %259 = arith.extf %258 : vector<1x128xbf16> to vector<1x128xf32>
      %c0_100 = arith.constant 0 : index
      %c0_101 = arith.constant 0 : index
      %260 = vector.load %arg5[%c0_100, %c0_101] : memref<5x128xbf16, #tpu.memory_space<vmem>>, vector<1x128xbf16>
      %261 = arith.extf %260 : vector<1x128xbf16> to vector<1x128xf32>
      %262 = arith.addf %259, %261 : vector<1x128xf32>
      %c1 = arith.constant 1 : index
      %c0_102 = arith.constant 0 : index
      %263 = vector.load %arg5[%c1, %c0_102] : memref<5x128xbf16, #tpu.memory_space<vmem>>, vector<4x128xbf16>
      %264 = arith.extf %263 : vector<4x128xbf16> to vector<4x128xf32>
      %265 = arith.truncf %262 : vector<1x128xf32> to vector<1x128xbf16>
      %c0_103 = arith.constant 0 : index
      %c0_104 = arith.constant 0 : index
      %266 = vector.load %arg22[%c0_103, %c0_104] : memref<10x128xbf16, #tpu.memory_space<vmem>>, vector<1x128xbf16>
      tpu.vector_store %arg22[%c0_103, %c0_104], %265 {strides = array<i32>} : memref<10x128xbf16, #tpu.memory_space<vmem>>, vector<1x128xbf16>,
      %267 = vector.extract_strided_slice %257 {offsets = [0, 0], sizes = [4, 128], strides = [1, 1]} : vector<8x128xf32> to vector<4x128xf32>
      %268 = arith.addf %267, %264 : vector<4x128xf32>
      %269 = arith.truncf %268 : vector<4x128xf32> to vector<4x128xbf16>
      %c1_105 = arith.constant 1 : index
      %c0_106 = arith.constant 0 : index
      %270 = vector.load %arg22[%c1_105, %c0_106] : memref<10x128xbf16, #tpu.memory_space<vmem>>, vector<4x128xbf16>
      tpu.vector_store %arg22[%c1_105, %c0_106], %269 {strides = array<i32>} : memref<10x128xbf16, #tpu.memory_space<vmem>>, vector<4x128xbf16>,
      %271 = arith.truncf %262 : vector<1x128xf32> to vector<1x128xbf16>
      %c5 = arith.constant 5 : index
      %c0_107 = arith.constant 0 : index
      %272 = vector.load %arg22[%c5, %c0_107] : memref<10x128xbf16, #tpu.memory_space<vmem>>, vector<1x128xbf16>
      tpu.vector_store %arg22[%c5, %c0_107], %271 {strides = array<i32>} : memref<10x128xbf16, #tpu.memory_space<vmem>>, vector<1x128xbf16>,
      %273 = vector.extract_strided_slice %257 {offsets = [4, 0], sizes = [4, 128], strides = [1, 1]} : vector<8x128xf32> to vector<4x128xf32>
      %274 = arith.addf %273, %264 : vector<4x128xf32>
      %275 = arith.truncf %274 : vector<4x128xf32> to vector<4x128xbf16>
      %c6 = arith.constant 6 : index
      %c0_108 = arith.constant 0 : index
      %276 = vector.load %arg22[%c6, %c0_108] : memref<10x128xbf16, #tpu.memory_space<vmem>>, vector<4x128xbf16>
      tpu.vector_store %arg22[%c6, %c0_108], %275 {strides = array<i32>} : memref<10x128xbf16, #tpu.memory_space<vmem>>, vector<4x128xbf16>,
    } else {
    }
    %c0 = arith.constant 0 : index
    %c0_1 = arith.constant 0 : index
    %3 = vector.load %arg22[%c0, %c0_1] : memref<10x128xbf16, #tpu.memory_space<vmem>>, vector<10x128xbf16>
    %4 = arith.extf %3 : vector<10x128xbf16> to vector<10x128xf32>
    %cst = arith.constant dense<0.000000e+00> : vector<10xf32>
    %5 = vector.multi_reduction <add>, %4, %cst [1] : vector<10x128xf32> to vector<10xf32>
    %6 = vector.shape_cast %5 : vector<10xf32> to vector<10x1xf32>
    %cst_2 = arith.constant 1.280000e+02 : f32
    %7 = vector.broadcast %cst_2 : f32 to vector<10x1xf32>
    %8 = arith.divf %6, %7 : vector<10x1xf32>
    %9 = vector.broadcast %8 : vector<10x1xf32> to vector<10x128xf32>
    %10 = arith.subf %4, %9 : vector<10x128xf32>
    %11 = arith.mulf %10, %10 : vector<10x128xf32>
    %cst_3 = arith.constant dense<0.000000e+00> : vector<10xf32>
    %12 = vector.multi_reduction <add>, %11, %cst_3 [1] : vector<10x128xf32> to vector<10xf32>
    %13 = vector.shape_cast %12 : vector<10xf32> to vector<10x1xf32>
    %cst_4 = arith.constant 1.280000e+02 : f32
    %14 = vector.broadcast %cst_4 : f32 to vector<10x1xf32>
    %15 = arith.divf %13, %14 : vector<10x1xf32>
    %16 = vector.broadcast %8 : vector<10x1xf32> to vector<10x128xf32>
    %17 = arith.subf %4, %16 : vector<10x128xf32>
    %cst_5 = arith.constant 9.99999997E-7 : f32
    %18 = vector.broadcast %cst_5 : f32 to vector<10x1xf32>
    %19 = arith.addf %15, %18 : vector<10x1xf32>
    %20 = math.rsqrt %19 : vector<10x1xf32>
    %21 = vector.broadcast %20 : vector<10x1xf32> to vector<10x128xf32>
    %22 = arith.mulf %17, %21 : vector<10x128xf32>
    %c0_6 = arith.constant 0 : index
    %c0_7 = arith.constant 0 : index
    %c0_8 = arith.constant 0 : index
    %23 = vector.load %arg6[%c0_6, %c0_7, %c0_8] : memref<1x1x128xbf16, #tpu.memory_space<vmem>>, vector<1x1x128xbf16>
    %24 = vector.shape_cast %23 : vector<1x1x128xbf16> to vector<1x128xbf16>
    %25 = arith.extf %24 : vector<1x128xbf16> to vector<1x128xf32>
    %26 = vector.broadcast %25 : vector<1x128xf32> to vector<10x128xf32>
    %27 = arith.mulf %22, %26 : vector<10x128xf32>
    %c0_9 = arith.constant 0 : index
    %c0_10 = arith.constant 0 : index
    %c0_11 = arith.constant 0 : index
    %28 = vector.load %arg7[%c0_9, %c0_10, %c0_11] : memref<1x1x128xbf16, #tpu.memory_space<vmem>>, vector<1x1x128xbf16>
    %29 = vector.shape_cast %28 : vector<1x1x128xbf16> to vector<1x128xbf16>
    %30 = arith.extf %29 : vector<1x128xbf16> to vector<1x128xf32>
    %31 = vector.broadcast %30 : vector<1x128xf32> to vector<10x128xf32>
    %32 = arith.addf %27, %31 : vector<10x128xf32>
    %33 = arith.truncf %32 : vector<10x128xf32> to vector<10x128xbf16>
    %c0_12 = arith.constant 0 : index
    %c0_13 = arith.constant 0 : index
    %c0_14 = arith.constant 0 : index
    %34 = vector.load %arg8[%c0_12, %c0_13, %c0_14] : memref<1x128x384xbf16, #tpu.memory_space<vmem>>, vector<1x128x384xbf16>
    %35 = vector.shape_cast %34 : vector<1x128x384xbf16> to vector<128x384xbf16>
    %cst_15 = arith.constant dense<0.000000e+00> : vector<10x384xf32>
    %36 = tpu.matmul %33, %35, %cst_15 {dimension_numbers = #tpu.dot_dimension_numbers<[1], [0], [0], [1], [0, 0, 1, 1], [], []>} : vector<10x128xbf16>, vector<128x384xbf16>, vector<10x384xf32> -> vector<10x384xf32>
    %c0_16 = arith.constant 0 : index
    %c0_17 = arith.constant 0 : index
    %c0_18 = arith.constant 0 : index
    %37 = vector.load %arg9[%c0_16, %c0_17, %c0_18] : memref<1x1x384xbf16, #tpu.memory_space<vmem>>, vector<1x1x384xbf16>
    %38 = vector.shape_cast %37 : vector<1x1x384xbf16> to vector<1x384xbf16>
    %39 = arith.extf %38 : vector<1x384xbf16> to vector<1x384xf32>
    %40 = vector.broadcast %39 : vector<1x384xf32> to vector<10x384xf32>
    %41 = arith.addf %36, %40 : vector<10x384xf32>
    %42 = tpu.iota {dimensions = array<i32: 0>} : vector<10x10xi32>
    %43 = tpu.iota {dimensions = array<i32: 1>} : vector<10x10xi32>
    %cst_19 = arith.constant -1.000000e+30 : f32
    %44 = vector.broadcast %cst_19 : f32 to vector<10x10xf32>
    %c0_i32_20 = arith.constant 0 : i32
    %45 = vector.broadcast %c0_i32_20 : i32 to vector<10x10xi32>
    %46 = arith.cmpi sge, %42, %45 : vector<10x10xi32>
    %c5_i32 = arith.constant 5 : i32
    %47 = vector.broadcast %c5_i32 : i32 to vector<10x10xi32>
    %48 = arith.cmpi slt, %42, %47 : vector<10x10xi32>
    %49 = arith.andi %46, %48 : vector<10x10xi1>
    %c0_i32_21 = arith.constant 0 : i32
    %50 = vector.broadcast %c0_i32_21 : i32 to vector<10x10xi32>
    %51 = arith.cmpi sge, %43, %50 : vector<10x10xi32>
    %c5_i32_22 = arith.constant 5 : i32
    %52 = vector.broadcast %c5_i32_22 : i32 to vector<10x10xi32>
    %53 = arith.cmpi slt, %43, %52 : vector<10x10xi32>
    %54 = arith.andi %51, %53 : vector<10x10xi1>
    %55 = arith.andi %49, %54 : vector<10x10xi1>
    %cst_23 = arith.constant 0.000000e+00 : f32
    %56 = vector.broadcast %cst_23 : f32 to vector<10x10xf32>
    %57 = arith.select %55, %56, %44 : vector<10x10xi1>, vector<10x10xf32>
    %c5_i32_24 = arith.constant 5 : i32
    %58 = vector.broadcast %c5_i32_24 : i32 to vector<10x10xi32>
    %59 = arith.cmpi sge, %42, %58 : vector<10x10xi32>
    %c10_i32 = arith.constant 10 : i32
    %60 = vector.broadcast %c10_i32 : i32 to vector<10x10xi32>
    %61 = arith.cmpi slt, %42, %60 : vector<10x10xi32>
    %62 = arith.andi %59, %61 : vector<10x10xi1>
    %c5_i32_25 = arith.constant 5 : i32
    %63 = vector.broadcast %c5_i32_25 : i32 to vector<10x10xi32>
    %64 = arith.cmpi sge, %43, %63 : vector<10x10xi32>
    %c10_i32_26 = arith.constant 10 : i32
    %65 = vector.broadcast %c10_i32_26 : i32 to vector<10x10xi32>
    %66 = arith.cmpi slt, %43, %65 : vector<10x10xi32>
    %67 = arith.andi %64, %66 : vector<10x10xi1>
    %68 = arith.andi %62, %67 : vector<10x10xi1>
    %cst_27 = arith.constant 0.000000e+00 : f32
    %69 = vector.broadcast %cst_27 : f32 to vector<10x10xf32>
    %70 = arith.select %68, %69, %57 : vector<10x10xi1>, vector<10x10xf32>
    %c0_28 = arith.constant 0 : index
    %c0_29 = arith.constant 0 : index
    %c0_30 = arith.constant 0 : index
    %71 = vector.load %arg10[%c0_28, %c0_29, %c0_30] : memref<1x128x128xbf16, #tpu.memory_space<vmem>>, vector<1x128x128xbf16>
    %72 = vector.shape_cast %71 : vector<1x128x128xbf16> to vector<128x128xbf16>
    %cst_31 = arith.constant 0.000000e+00 : f32
    %73 = vector.broadcast %cst_31 : f32 to vector<10x128xf32>
    %74 = vector.extract_strided_slice %41 {offsets = [0, 0], sizes = [10, 32], strides = [1, 1]} : vector<10x384xf32> to vector<10x32xf32>
    %75 = arith.truncf %74 : vector<10x32xf32> to vector<10x32xbf16>
    %76 = vector.extract_strided_slice %41 {offsets = [0, 128], sizes = [10, 32], strides = [1, 1]} : vector<10x384xf32> to vector<10x32xf32>
    %77 = arith.truncf %76 : vector<10x32xf32> to vector<10x32xbf16>
    %78 = vector.extract_strided_slice %41 {offsets = [0, 256], sizes = [10, 32], strides = [1, 1]} : vector<10x384xf32> to vector<10x32xf32>
    %79 = arith.truncf %78 : vector<10x32xf32> to vector<10x32xbf16>
    %cst_32 = arith.constant dense<0.000000e+00> : vector<10x10xf32>
    %80 = tpu.matmul %75, %77, %cst_32 {dimension_numbers = #tpu.dot_dimension_numbers<[1], [1], [0], [0], [0, 0, 1, 0], [], []>} : vector<10x32xbf16>, vector<10x32xbf16>, vector<10x10xf32> -> vector<10x10xf32>
    %cst_33 = arith.constant 0.176776692 : f32
    %81 = vector.broadcast %cst_33 : f32 to vector<10x10xf32>
    %82 = arith.mulf %80, %81 : vector<10x10xf32>
    %83 = arith.addf %82, %70 : vector<10x10xf32>
    %cst_34 = arith.constant dense<0xFF800000> : vector<10xf32>
    %84 = vector.multi_reduction <maximumf>, %83, %cst_34 [1] : vector<10x10xf32> to vector<10xf32>
    %85 = vector.shape_cast %84 : vector<10xf32> to vector<10x1xf32>
    %86 = vector.broadcast %85 : vector<10x1xf32> to vector<10x10xf32>
    %87 = arith.subf %83, %86 : vector<10x10xf32>
    %88 = math.exp %87 : vector<10x10xf32>
    %cst_35 = arith.constant dense<0.000000e+00> : vector<10xf32>
    %89 = vector.multi_reduction <add>, %88, %cst_35 [1] : vector<10x10xf32> to vector<10xf32>
    %90 = vector.shape_cast %89 : vector<10xf32> to vector<10x1xf32>
    %91 = tpu.reciprocal %90 {approx = true} : vector<10x1xf32> -> vector<10x1xf32>
    %92 = vector.broadcast %91 : vector<10x1xf32> to vector<10x10xf32>
    %93 = arith.mulf %88, %92 : vector<10x10xf32>
    %94 = arith.truncf %93 : vector<10x10xf32> to vector<10x10xbf16>
    %cst_36 = arith.constant dense<0.000000e+00> : vector<10x32xf32>
    %95 = tpu.matmul %94, %79, %cst_36 {dimension_numbers = #tpu.dot_dimension_numbers<[1], [0], [0], [1], [0, 0, 1, 1], [], []>} : vector<10x10xbf16>, vector<10x32xbf16>, vector<10x32xf32> -> vector<10x32xf32>
    %96 = arith.truncf %95 : vector<10x32xf32> to vector<10x32xbf16>
    %97 = vector.extract_strided_slice %72 {offsets = [0, 0], sizes = [32, 128], strides = [1, 1]} : vector<128x128xbf16> to vector<32x128xbf16>
    %cst_37 = arith.constant dense<0.000000e+00> : vector<10x128xf32>
    %98 = tpu.matmul %96, %97, %cst_37 {dimension_numbers = #tpu.dot_dimension_numbers<[1], [0], [0], [1], [0, 0, 1, 1], [], []>} : vector<10x32xbf16>, vector<32x128xbf16>, vector<10x128xf32> -> vector<10x128xf32>
    %99 = arith.addf %73, %98 : vector<10x128xf32>
    %100 = vector.extract_strided_slice %41 {offsets = [0, 32], sizes = [10, 32], strides = [1, 1]} : vector<10x384xf32> to vector<10x32xf32>
    %101 = arith.truncf %100 : vector<10x32xf32> to vector<10x32xbf16>
    %102 = vector.extract_strided_slice %41 {offsets = [0, 160], sizes = [10, 32], strides = [1, 1]} : vector<10x384xf32> to vector<10x32xf32>
    %103 = arith.truncf %102 : vector<10x32xf32> to vector<10x32xbf16>
    %104 = vector.extract_strided_slice %41 {offsets = [0, 288], sizes = [10, 32], strides = [1, 1]} : vector<10x384xf32> to vector<10x32xf32>
    %105 = arith.truncf %104 : vector<10x32xf32> to vector<10x32xbf16>
    %cst_38 = arith.constant dense<0.000000e+00> : vector<10x10xf32>
    %106 = tpu.matmul %101, %103, %cst_38 {dimension_numbers = #tpu.dot_dimension_numbers<[1], [1], [0], [0], [0, 0, 1, 0], [], []>} : vector<10x32xbf16>, vector<10x32xbf16>, vector<10x10xf32> -> vector<10x10xf32>
    %cst_39 = arith.constant 0.176776692 : f32
    %107 = vector.broadcast %cst_39 : f32 to vector<10x10xf32>
    %108 = arith.mulf %106, %107 : vector<10x10xf32>
    %109 = arith.addf %108, %70 : vector<10x10xf32>
    %cst_40 = arith.constant dense<0xFF800000> : vector<10xf32>
    %110 = vector.multi_reduction <maximumf>, %109, %cst_40 [1] : vector<10x10xf32> to vector<10xf32>
    %111 = vector.shape_cast %110 : vector<10xf32> to vector<10x1xf32>
    %112 = vector.broadcast %111 : vector<10x1xf32> to vector<10x10xf32>
    %113 = arith.subf %109, %112 : vector<10x10xf32>
    %114 = math.exp %113 : vector<10x10xf32>
    %cst_41 = arith.constant dense<0.000000e+00> : vector<10xf32>
    %115 = vector.multi_reduction <add>, %114, %cst_41 [1] : vector<10x10xf32> to vector<10xf32>
    %116 = vector.shape_cast %115 : vector<10xf32> to vector<10x1xf32>
    %117 = tpu.reciprocal %116 {approx = true} : vector<10x1xf32> -> vector<10x1xf32>
    %118 = vector.broadcast %117 : vector<10x1xf32> to vector<10x10xf32>
    %119 = arith.mulf %114, %118 : vector<10x10xf32>
    %120 = arith.truncf %119 : vector<10x10xf32> to vector<10x10xbf16>
    %cst_42 = arith.constant dense<0.000000e+00> : vector<10x32xf32>
    %121 = tpu.matmul %120, %105, %cst_42 {dimension_numbers = #tpu.dot_dimension_numbers<[1], [0], [0], [1], [0, 0, 1, 1], [], []>} : vector<10x10xbf16>, vector<10x32xbf16>, vector<10x32xf32> -> vector<10x32xf32>
    %122 = arith.truncf %121 : vector<10x32xf32> to vector<10x32xbf16>
    %123 = vector.extract_strided_slice %72 {offsets = [32, 0], sizes = [32, 128], strides = [1, 1]} : vector<128x128xbf16> to vector<32x128xbf16>
    %cst_43 = arith.constant dense<0.000000e+00> : vector<10x128xf32>
    %124 = tpu.matmul %122, %123, %cst_43 {dimension_numbers = #tpu.dot_dimension_numbers<[1], [0], [0], [1], [0, 0, 1, 1], [], []>} : vector<10x32xbf16>, vector<32x128xbf16>, vector<10x128xf32> -> vector<10x128xf32>
    %125 = arith.addf %99, %124 : vector<10x128xf32>
    %126 = vector.extract_strided_slice %41 {offsets = [0, 64], sizes = [10, 32], strides = [1, 1]} : vector<10x384xf32> to vector<10x32xf32>
    %127 = arith.truncf %126 : vector<10x32xf32> to vector<10x32xbf16>
    %128 = vector.extract_strided_slice %41 {offsets = [0, 192], sizes = [10, 32], strides = [1, 1]} : vector<10x384xf32> to vector<10x32xf32>
    %129 = arith.truncf %128 : vector<10x32xf32> to vector<10x32xbf16>
    %130 = vector.extract_strided_slice %41 {offsets = [0, 320], sizes = [10, 32], strides = [1, 1]} : vector<10x384xf32> to vector<10x32xf32>
    %131 = arith.truncf %130 : vector<10x32xf32> to vector<10x32xbf16>
    %cst_44 = arith.constant dense<0.000000e+00> : vector<10x10xf32>
    %132 = tpu.matmul %127, %129, %cst_44 {dimension_numbers = #tpu.dot_dimension_numbers<[1], [1], [0], [0], [0, 0, 1, 0], [], []>} : vector<10x32xbf16>, vector<10x32xbf16>, vector<10x10xf32> -> vector<10x10xf32>
    %cst_45 = arith.constant 0.176776692 : f32
    %133 = vector.broadcast %cst_45 : f32 to vector<10x10xf32>
    %134 = arith.mulf %132, %133 : vector<10x10xf32>
    %135 = arith.addf %134, %70 : vector<10x10xf32>
    %cst_46 = arith.constant dense<0xFF800000> : vector<10xf32>
    %136 = vector.multi_reduction <maximumf>, %135, %cst_46 [1] : vector<10x10xf32> to vector<10xf32>
    %137 = vector.shape_cast %136 : vector<10xf32> to vector<10x1xf32>
    %138 = vector.broadcast %137 : vector<10x1xf32> to vector<10x10xf32>
    %139 = arith.subf %135, %138 : vector<10x10xf32>
    %140 = math.exp %139 : vector<10x10xf32>
    %cst_47 = arith.constant dense<0.000000e+00> : vector<10xf32>
    %141 = vector.multi_reduction <add>, %140, %cst_47 [1] : vector<10x10xf32> to vector<10xf32>
    %142 = vector.shape_cast %141 : vector<10xf32> to vector<10x1xf32>
    %143 = tpu.reciprocal %142 {approx = true} : vector<10x1xf32> -> vector<10x1xf32>
    %144 = vector.broadcast %143 : vector<10x1xf32> to vector<10x10xf32>
    %145 = arith.mulf %140, %144 : vector<10x10xf32>
    %146 = arith.truncf %145 : vector<10x10xf32> to vector<10x10xbf16>
    %cst_48 = arith.constant dense<0.000000e+00> : vector<10x32xf32>
    %147 = tpu.matmul %146, %131, %cst_48 {dimension_numbers = #tpu.dot_dimension_numbers<[1], [0], [0], [1], [0, 0, 1, 1], [], []>} : vector<10x10xbf16>, vector<10x32xbf16>, vector<10x32xf32> -> vector<10x32xf32>
    %148 = arith.truncf %147 : vector<10x32xf32> to vector<10x32xbf16>
    %149 = vector.extract_strided_slice %72 {offsets = [64, 0], sizes = [32, 128], strides = [1, 1]} : vector<128x128xbf16> to vector<32x128xbf16>
    %cst_49 = arith.constant dense<0.000000e+00> : vector<10x128xf32>
    %150 = tpu.matmul %148, %149, %cst_49 {dimension_numbers = #tpu.dot_dimension_numbers<[1], [0], [0], [1], [0, 0, 1, 1], [], []>} : vector<10x32xbf16>, vector<32x128xbf16>, vector<10x128xf32> -> vector<10x128xf32>
    %151 = arith.addf %125, %150 : vector<10x128xf32>
    %152 = vector.extract_strided_slice %41 {offsets = [0, 96], sizes = [10, 32], strides = [1, 1]} : vector<10x384xf32> to vector<10x32xf32>
    %153 = arith.truncf %152 : vector<10x32xf32> to vector<10x32xbf16>
    %154 = vector.extract_strided_slice %41 {offsets = [0, 224], sizes = [10, 32], strides = [1, 1]} : vector<10x384xf32> to vector<10x32xf32>
    %155 = arith.truncf %154 : vector<10x32xf32> to vector<10x32xbf16>
    %156 = vector.extract_strided_slice %41 {offsets = [0, 352], sizes = [10, 32], strides = [1, 1]} : vector<10x384xf32> to vector<10x32xf32>
    %157 = arith.truncf %156 : vector<10x32xf32> to vector<10x32xbf16>
    %cst_50 = arith.constant dense<0.000000e+00> : vector<10x10xf32>
    %158 = tpu.matmul %153, %155, %cst_50 {dimension_numbers = #tpu.dot_dimension_numbers<[1], [1], [0], [0], [0, 0, 1, 0], [], []>} : vector<10x32xbf16>, vector<10x32xbf16>, vector<10x10xf32> -> vector<10x10xf32>
    %cst_51 = arith.constant 0.176776692 : f32
    %159 = vector.broadcast %cst_51 : f32 to vector<10x10xf32>
    %160 = arith.mulf %158, %159 : vector<10x10xf32>
    %161 = arith.addf %160, %70 : vector<10x10xf32>
    %cst_52 = arith.constant dense<0xFF800000> : vector<10xf32>
    %162 = vector.multi_reduction <maximumf>, %161, %cst_52 [1] : vector<10x10xf32> to vector<10xf32>
    %163 = vector.shape_cast %162 : vector<10xf32> to vector<10x1xf32>
    %164 = vector.broadcast %163 : vector<10x1xf32> to vector<10x10xf32>
    %165 = arith.subf %161, %164 : vector<10x10xf32>
    %166 = math.exp %165 : vector<10x10xf32>
    %cst_53 = arith.constant dense<0.000000e+00> : vector<10xf32>
    %167 = vector.multi_reduction <add>, %166, %cst_53 [1] : vector<10x10xf32> to vector<10xf32>
    %168 = vector.shape_cast %167 : vector<10xf32> to vector<10x1xf32>
    %169 = tpu.reciprocal %168 {approx = true} : vector<10x1xf32> -> vector<10x1xf32>
    %170 = vector.broadcast %169 : vector<10x1xf32> to vector<10x10xf32>
    %171 = arith.mulf %166, %170 : vector<10x10xf32>
    %172 = arith.truncf %171 : vector<10x10xf32> to vector<10x10xbf16>
    %cst_54 = arith.constant dense<0.000000e+00> : vector<10x32xf32>
    %173 = tpu.matmul %172, %157, %cst_54 {dimension_numbers = #tpu.dot_dimension_numbers<[1], [0], [0], [1], [0, 0, 1, 1], [], []>} : vector<10x10xbf16>, vector<10x32xbf16>, vector<10x32xf32> -> vector<10x32xf32>
    %174 = arith.truncf %173 : vector<10x32xf32> to vector<10x32xbf16>
    %175 = vector.extract_strided_slice %72 {offsets = [96, 0], sizes = [32, 128], strides = [1, 1]} : vector<128x128xbf16> to vector<32x128xbf16>
    %cst_55 = arith.constant dense<0.000000e+00> : vector<10x128xf32>
    %176 = tpu.matmul %174, %175, %cst_55 {dimension_numbers = #tpu.dot_dimension_numbers<[1], [0], [0], [1], [0, 0, 1, 1], [], []>} : vector<10x32xbf16>, vector<32x128xbf16>, vector<10x128xf32> -> vector<10x128xf32>
    %177 = arith.addf %151, %176 : vector<10x128xf32>
    %c0_56 = arith.constant 0 : index
    %c0_57 = arith.constant 0 : index
    %c0_58 = arith.constant 0 : index
    %178 = vector.load %arg11[%c0_56, %c0_57, %c0_58] : memref<1x1x128xbf16, #tpu.memory_space<vmem>>, vector<1x1x128xbf16>
    %179 = vector.shape_cast %178 : vector<1x1x128xbf16> to vector<1x128xbf16>
    %180 = arith.extf %179 : vector<1x128xbf16> to vector<1x128xf32>
    %181 = vector.broadcast %180 : vector<1x128xf32> to vector<10x128xf32>
    %182 = arith.addf %177, %181 : vector<10x128xf32>
    %183 = arith.truncf %182 : vector<10x128xf32> to vector<10x128xbf16>
    %184 = arith.addf %3, %183 : vector<10x128xbf16>
    %185 = arith.extf %184 : vector<10x128xbf16> to vector<10x128xf32>
    %cst_59 = arith.constant dense<0.000000e+00> : vector<10xf32>
    %186 = vector.multi_reduction <add>, %185, %cst_59 [1] : vector<10x128xf32> to vector<10xf32>
    %187 = vector.shape_cast %186 : vector<10xf32> to vector<10x1xf32>
    %cst_60 = arith.constant 1.280000e+02 : f32
    %188 = vector.broadcast %cst_60 : f32 to vector<10x1xf32>
    %189 = arith.divf %187, %188 : vector<10x1xf32>
    %190 = vector.broadcast %189 : vector<10x1xf32> to vector<10x128xf32>
    %191 = arith.subf %185, %190 : vector<10x128xf32>
    %192 = arith.mulf %191, %191 : vector<10x128xf32>
    %cst_61 = arith.constant dense<0.000000e+00> : vector<10xf32>
    %193 = vector.multi_reduction <add>, %192, %cst_61 [1] : vector<10x128xf32> to vector<10xf32>
    %194 = vector.shape_cast %193 : vector<10xf32> to vector<10x1xf32>
    %cst_62 = arith.constant 1.280000e+02 : f32
    %195 = vector.broadcast %cst_62 : f32 to vector<10x1xf32>
    %196 = arith.divf %194, %195 : vector<10x1xf32>
    %197 = vector.broadcast %189 : vector<10x1xf32> to vector<10x128xf32>
    %198 = arith.subf %185, %197 : vector<10x128xf32>
    %cst_63 = arith.constant 9.99999997E-7 : f32
    %199 = vector.broadcast %cst_63 : f32 to vector<10x1xf32>
    %200 = arith.addf %196, %199 : vector<10x1xf32>
    %201 = math.rsqrt %200 : vector<10x1xf32>
    %202 = vector.broadcast %201 : vector<10x1xf32> to vector<10x128xf32>
    %203 = arith.mulf %198, %202 : vector<10x128xf32>
    %c0_64 = arith.constant 0 : index
    %c0_65 = arith.constant 0 : index
    %c0_66 = arith.constant 0 : index
    %204 = vector.load %arg12[%c0_64, %c0_65, %c0_66] : memref<1x1x128xbf16, #tpu.memory_space<vmem>>, vector<1x1x128xbf16>
    %205 = vector.shape_cast %204 : vector<1x1x128xbf16> to vector<1x128xbf16>
    %206 = arith.extf %205 : vector<1x128xbf16> to vector<1x128xf32>
    %207 = vector.broadcast %206 : vector<1x128xf32> to vector<10x128xf32>
    %208 = arith.mulf %203, %207 : vector<10x128xf32>
    %c0_67 = arith.constant 0 : index
    %c0_68 = arith.constant 0 : index
    %c0_69 = arith.constant 0 : index
    %209 = vector.load %arg13[%c0_67, %c0_68, %c0_69] : memref<1x1x128xbf16, #tpu.memory_space<vmem>>, vector<1x1x128xbf16>
    %210 = vector.shape_cast %209 : vector<1x1x128xbf16> to vector<1x128xbf16>
    %211 = arith.extf %210 : vector<1x128xbf16> to vector<1x128xf32>
    %212 = vector.broadcast %211 : vector<1x128xf32> to vector<10x128xf32>
    %213 = arith.addf %208, %212 : vector<10x128xf32>
    %214 = arith.truncf %213 : vector<10x128xf32> to vector<10x128xbf16>
    %c0_70 = arith.constant 0 : index
    %c0_71 = arith.constant 0 : index
    %c0_72 = arith.constant 0 : index
    %215 = vector.load %arg14[%c0_70, %c0_71, %c0_72] : memref<1x128x512xbf16, #tpu.memory_space<vmem>>, vector<1x128x512xbf16>
    %216 = vector.shape_cast %215 : vector<1x128x512xbf16> to vector<128x512xbf16>
    %cst_73 = arith.constant dense<0.000000e+00> : vector<10x512xf32>
    %217 = tpu.matmul %214, %216, %cst_73 {dimension_numbers = #tpu.dot_dimension_numbers<[1], [0], [0], [1], [0, 0, 1, 1], [], []>} : vector<10x128xbf16>, vector<128x512xbf16>, vector<10x512xf32> -> vector<10x512xf32>
    %c0_74 = arith.constant 0 : index
    %c0_75 = arith.constant 0 : index
    %c0_76 = arith.constant 0 : index
    %218 = vector.load %arg15[%c0_74, %c0_75, %c0_76] : memref<1x1x512xbf16, #tpu.memory_space<vmem>>, vector<1x1x512xbf16>
    %219 = vector.shape_cast %218 : vector<1x1x512xbf16> to vector<1x512xbf16>
    %220 = arith.extf %219 : vector<1x512xbf16> to vector<1x512xf32>
    %221 = vector.broadcast %220 : vector<1x512xf32> to vector<10x512xf32>
    %222 = arith.addf %217, %221 : vector<10x512xf32>
    %223 = arith.mulf %222, %222 : vector<10x512xf32>
    %224 = arith.mulf %222, %223 : vector<10x512xf32>
    %cst_77 = arith.constant 4.471500e-02 : f32
    %225 = vector.broadcast %cst_77 : f32 to vector<10x512xf32>
    %226 = arith.mulf %225, %224 : vector<10x512xf32>
    %227 = arith.addf %222, %226 : vector<10x512xf32>
    %cst_78 = arith.constant 0.797884583 : f32
    %228 = vector.broadcast %cst_78 : f32 to vector<10x512xf32>
    %229 = arith.mulf %228, %227 : vector<10x512xf32>
    %230 = math.tanh %229 : vector<10x512xf32>
    %cst_79 = arith.constant 1.000000e+00 : f32
    %231 = vector.broadcast %cst_79 : f32 to vector<10x512xf32>
    %232 = arith.addf %231, %230 : vector<10x512xf32>
    %cst_80 = arith.constant 5.000000e-01 : f32
    %233 = vector.broadcast %cst_80 : f32 to vector<10x512xf32>
    %234 = arith.mulf %233, %232 : vector<10x512xf32>
    %235 = arith.mulf %222, %234 : vector<10x512xf32>
    %236 = arith.truncf %235 : vector<10x512xf32> to vector<10x512xbf16>
    %c0_81 = arith.constant 0 : index
    %c0_82 = arith.constant 0 : index
    %c0_83 = arith.constant 0 : index
    %237 = vector.load %arg16[%c0_81, %c0_82, %c0_83] : memref<1x512x128xbf16, #tpu.memory_space<vmem>>, vector<1x512x128xbf16>
    %238 = vector.shape_cast %237 : vector<1x512x128xbf16> to vector<512x128xbf16>
    %cst_84 = arith.constant dense<0.000000e+00> : vector<10x128xf32>
    %239 = tpu.matmul %236, %238, %cst_84 {dimension_numbers = #tpu.dot_dimension_numbers<[1], [0], [0], [1], [0, 0, 1, 1], [], []>} : vector<10x512xbf16>, vector<512x128xbf16>, vector<10x128xf32> -> vector<10x128xf32>
    %c0_85 = arith.constant 0 : index
    %c0_86 = arith.constant 0 : index
    %c0_87 = arith.constant 0 : index
    %240 = vector.load %arg17[%c0_85, %c0_86, %c0_87] : memref<1x1x128xbf16, #tpu.memory_space<vmem>>, vector<1x1x128xbf16>
    %241 = vector.shape_cast %240 : vector<1x1x128xbf16> to vector<1x128xbf16>
    %242 = arith.extf %241 : vector<1x128xbf16> to vector<1x128xf32>
    %243 = vector.broadcast %242 : vector<1x128xf32> to vector<10x128xf32>
    %244 = arith.addf %239, %243 : vector<10x128xf32>
    %245 = arith.truncf %244 : vector<10x128xf32> to vector<10x128xbf16>
    %246 = arith.addf %184, %245 : vector<10x128xbf16>
    %c0_88 = arith.constant 0 : index
    %c0_89 = arith.constant 0 : index
    %247 = vector.load %arg22[%c0_88, %c0_89] : memref<10x128xbf16, #tpu.memory_space<vmem>>, vector<10x128xbf16>
    tpu.vector_store %arg22[%c0_88, %c0_89], %246 {strides = array<i32>} : memref<10x128xbf16, #tpu.memory_space<vmem>>, vector<10x128xbf16>,
    %c1_i32 = arith.constant 1 : i32
    %248 = arith.cmpi eq, %arg0, %c1_i32 : i32
    %249 = arith.extui %248 : i1 to i32
    %c0_i32_90 = arith.constant 0 : i32
    %250 = arith.cmpi ne, %249, %c0_i32_90 : i32
    scf.if %250 {
      %c0_91 = arith.constant 0 : index
      %c0_92 = arith.constant 0 : index
      %251 = vector.load %arg22[%c0_91, %c0_92] : memref<10x128xbf16, #tpu.memory_space<vmem>>, vector<1x128xbf16>
      %c5 = arith.constant 5 : index
      %c0_93 = arith.constant 0 : index
      %252 = vector.load %arg22[%c5, %c0_93] : memref<10x128xbf16, #tpu.memory_space<vmem>>, vector<1x128xbf16>
      %253 = tpu.concatenate %251, %252 in 0 : vector<1x128xbf16>, vector<1x128xbf16> -> vector<2x128xbf16>
      %254 = arith.extf %253 : vector<2x128xbf16> to vector<2x128xf32>
      %cst_94 = arith.constant dense<0.000000e+00> : vector<2xf32>
      %255 = vector.multi_reduction <add>, %254, %cst_94 [1] : vector<2x128xf32> to vector<2xf32>
      %256 = vector.shape_cast %255 : vector<2xf32> to vector<2x1xf32>
      %cst_95 = arith.constant 1.280000e+02 : f32
      %257 = vector.broadcast %cst_95 : f32 to vector<2x1xf32>
      %258 = arith.divf %256, %257 : vector<2x1xf32>
      %259 = vector.broadcast %258 : vector<2x1xf32> to vector<2x128xf32>
      %260 = arith.subf %254, %259 : vector<2x128xf32>
      %261 = arith.mulf %260, %260 : vector<2x128xf32>
      %cst_96 = arith.constant dense<0.000000e+00> : vector<2xf32>
      %262 = vector.multi_reduction <add>, %261, %cst_96 [1] : vector<2x128xf32> to vector<2xf32>
      %263 = vector.shape_cast %262 : vector<2xf32> to vector<2x1xf32>
      %cst_97 = arith.constant 1.280000e+02 : f32
      %264 = vector.broadcast %cst_97 : f32 to vector<2x1xf32>
      %265 = arith.divf %263, %264 : vector<2x1xf32>
      %266 = vector.broadcast %258 : vector<2x1xf32> to vector<2x128xf32>
      %267 = arith.subf %254, %266 : vector<2x128xf32>
      %cst_98 = arith.constant 9.99999997E-7 : f32
      %268 = vector.broadcast %cst_98 : f32 to vector<2x1xf32>
      %269 = arith.addf %265, %268 : vector<2x1xf32>
      %270 = math.rsqrt %269 : vector<2x1xf32>
      %271 = vector.broadcast %270 : vector<2x1xf32> to vector<2x128xf32>
      %272 = arith.mulf %267, %271 : vector<2x128xf32>
      %c0_99 = arith.constant 0 : index
      %c0_100 = arith.constant 0 : index
      %273 = vector.load %arg18[%c0_99, %c0_100] : memref<1x128xbf16, #tpu.memory_space<vmem>>, vector<1x128xbf16>
      %274 = arith.extf %273 : vector<1x128xbf16> to vector<1x128xf32>
      %275 = vector.broadcast %274 : vector<1x128xf32> to vector<2x128xf32>
      %276 = arith.mulf %272, %275 : vector<2x128xf32>
      %c0_101 = arith.constant 0 : index
      %c0_102 = arith.constant 0 : index
      %277 = vector.load %arg19[%c0_101, %c0_102] : memref<1x128xbf16, #tpu.memory_space<vmem>>, vector<1x128xbf16>
      %278 = arith.extf %277 : vector<1x128xbf16> to vector<1x128xf32>
      %279 = vector.broadcast %278 : vector<1x128xf32> to vector<2x128xf32>
      %280 = arith.addf %276, %279 : vector<2x128xf32>
      %281 = arith.truncf %280 : vector<2x128xf32> to vector<2x128xbf16>
      %c0_103 = arith.constant 0 : index
      %c0_104 = arith.constant 0 : index
      %282 = vector.load %arg20[%c0_103, %c0_104] : memref<128x128xbf16, #tpu.memory_space<vmem>>, vector<128x128xbf16>
      %cst_105 = arith.constant dense<0.000000e+00> : vector<2x128xf32>
      %283 = tpu.matmul %281, %282, %cst_105 {dimension_numbers = #tpu.dot_dimension_numbers<[1], [0], [0], [1], [0, 0, 1, 1], [], []>} : vector<2x128xbf16>, vector<128x128xbf16>, vector<2x128xf32> -> vector<2x128xf32>
      %284 = arith.mulf %283, %283 : vector<2x128xf32>
      %cst_106 = arith.constant dense<0.000000e+00> : vector<2xf32>
      %285 = vector.multi_reduction <add>, %284, %cst_106 [1] : vector<2x128xf32> to vector<2xf32>
      %286 = vector.shape_cast %285 : vector<2xf32> to vector<2x1xf32>
      %cst_107 = arith.constant 1.000000e-24 : f32
      %287 = vector.broadcast %cst_107 : f32 to vector<2x1xf32>
      %288 = arith.maximumf %286, %287 : vector<2x1xf32>
      %289 = math.rsqrt %288 : vector<2x1xf32>
      %290 = vector.broadcast %289 : vector<2x1xf32> to vector<2x128xf32>
      %291 = arith.mulf %283, %290 : vector<2x128xf32>
      %292 = arith.truncf %291 : vector<2x128xf32> to vector<2x128xbf16>
      %c0_108 = arith.constant 0 : index
      %c0_109 = arith.constant 0 : index
      %293 = vector.load %arg21[%c0_108, %c0_109] : memref<2x128xbf16, #tpu.memory_space<vmem>>, vector<2x128xbf16>
      tpu.vector_store %arg21[%c0_108, %c0_109], %292 {strides = array<i32>} : memref<2x128xbf16, #tpu.memory_space<vmem>>, vector<2x128xbf16>,
    } else {
    }
    return
  }
  func.func @transform_0(%arg0: i32) -> (i32, i32) {
    %c0_i32 = arith.constant 0 : i32
    %c0_i32_0 = arith.constant 0 : i32
    %c0_i32_1 = arith.constant 0 : i32
    return %c0_i32, %c0_i32_0 : i32, i32
  }
  func.func @transform_1(%arg0: i32) -> (i32, i32) {
    %c0_i32 = arith.constant 0 : i32
    %c0_i32_0 = arith.constant 0 : i32
    %c0_i32_1 = arith.constant 0 : i32
    return %c0_i32, %c0_i32_0 : i32, i32
  }
  func.func @transform_2(%arg0: i32) -> (i32, i32) {
    %c0_i32 = arith.constant 0 : i32
    %c0_i32_0 = arith.constant 0 : i32
    %c0_i32_1 = arith.constant 0 : i32
    return %c0_i32, %c0_i32_0 : i32, i32
  }
  func.func @transform_3(%arg0: i32) -> (i32, i32) {
    %c0_i32 = arith.constant 0 : i32
    %c0_i32_0 = arith.constant 0 : i32
    %c0_i32_1 = arith.constant 0 : i32
    return %c0_i32, %c0_i32_0 : i32, i32
  }
  func.func @transform_4(%arg0: i32) -> (i32, i32) {
    %c0_i32 = arith.constant 0 : i32
    %c0_i32_0 = arith.constant 0 : i32
    %c0_i32_1 = arith.constant 0 : i32
    return %c0_i32, %c0_i32_0 : i32, i32
  }
  func.func @transform_5(%arg0: i32) -> (i32, i32, i32) {
    %c0_i32 = arith.constant 0 : i32
    %c0_i32_0 = arith.constant 0 : i32
    %c0_i32_1 = arith.constant 0 : i32
    return %arg0, %c0_i32, %c0_i32_0 : i32, i32, i32
  }
  func.func @transform_6(%arg0: i32) -> (i32, i32, i32) {
    %c0_i32 = arith.constant 0 : i32
    %c0_i32_0 = arith.constant 0 : i32
    %c0_i32_1 = arith.constant 0 : i32
    return %arg0, %c0_i32, %c0_i32_0 : i32, i32, i32
  }
  func.func @transform_7(%arg0: i32) -> (i32, i32, i32) {
    %c0_i32 = arith.constant 0 : i32
    %c0_i32_0 = arith.constant 0 : i32
    %c0_i32_1 = arith.constant 0 : i32
    return %arg0, %c0_i32, %c0_i32_0 : i32, i32, i32
  }
  func.func @transform_8(%arg0: i32) -> (i32, i32, i32) {
    %c0_i32 = arith.constant 0 : i32
    %c0_i32_0 = arith.constant 0 : i32
    %c0_i32_1 = arith.constant 0 : i32
    return %arg0, %c0_i32, %c0_i32_0 : i32, i32, i32
  }
  func.func @transform_9(%arg0: i32) -> (i32, i32, i32) {
    %c0_i32 = arith.constant 0 : i32
    %c0_i32_0 = arith.constant 0 : i32
    %c0_i32_1 = arith.constant 0 : i32
    return %arg0, %c0_i32, %c0_i32_0 : i32, i32, i32
  }
  func.func @transform_10(%arg0: i32) -> (i32, i32, i32) {
    %c0_i32 = arith.constant 0 : i32
    %c0_i32_0 = arith.constant 0 : i32
    %c0_i32_1 = arith.constant 0 : i32
    return %arg0, %c0_i32, %c0_i32_0 : i32, i32, i32
  }
  func.func @transform_11(%arg0: i32) -> (i32, i32, i32) {
    %c0_i32 = arith.constant 0 : i32
    %c0_i32_0 = arith.constant 0 : i32
    %c0_i32_1 = arith.constant 0 : i32
    return %arg0, %c0_i32, %c0_i32_0 : i32, i32, i32
  }
  func.func @transform_12(%arg0: i32) -> (i32, i32, i32) {
    %c0_i32 = arith.constant 0 : i32
    %c0_i32_0 = arith.constant 0 : i32
    %c0_i32_1 = arith.constant 0 : i32
    return %arg0, %c0_i32, %c0_i32_0 : i32, i32, i32
  }
  func.func @transform_13(%arg0: i32) -> (i32, i32, i32) {
    %c0_i32 = arith.constant 0 : i32
    %c0_i32_0 = arith.constant 0 : i32
    %c0_i32_1 = arith.constant 0 : i32
    return %arg0, %c0_i32, %c0_i32_0 : i32, i32, i32
  }
  func.func @transform_14(%arg0: i32) -> (i32, i32, i32) {
    %c0_i32 = arith.constant 0 : i32
    %c0_i32_0 = arith.constant 0 : i32
    %c0_i32_1 = arith.constant 0 : i32
    return %arg0, %c0_i32, %c0_i32_0 : i32, i32, i32
  }
  func.func @transform_15(%arg0: i32) -> (i32, i32, i32) {
    %c0_i32 = arith.constant 0 : i32
    %c0_i32_0 = arith.constant 0 : i32
    %c0_i32_1 = arith.constant 0 : i32
    return %arg0, %c0_i32, %c0_i32_0 : i32, i32, i32
  }
  func.func @transform_16(%arg0: i32) -> (i32, i32, i32) {
    %c0_i32 = arith.constant 0 : i32
    %c0_i32_0 = arith.constant 0 : i32
    %c0_i32_1 = arith.constant 0 : i32
    return %arg0, %c0_i32, %c0_i32_0 : i32, i32, i32
  }
  func.func @transform_17(%arg0: i32) -> (i32, i32) {
    %c0_i32 = arith.constant 0 : i32
    %c0_i32_0 = arith.constant 0 : i32
    %c0_i32_1 = arith.constant 0 : i32
    return %c0_i32, %c0_i32_0 : i32, i32
  }
  func.func @transform_18(%arg0: i32) -> (i32, i32) {
    %c0_i32 = arith.constant 0 : i32
    %c0_i32_0 = arith.constant 0 : i32
    %c0_i32_1 = arith.constant 0 : i32
    return %c0_i32, %c0_i32_0 : i32, i32
  }
  func.func @transform_19(%arg0: i32) -> (i32, i32) {
    %c0_i32 = arith.constant 0 : i32
    %c0_i32_0 = arith.constant 0 : i32
    %c0_i32_1 = arith.constant 0 : i32
    return %c0_i32, %c0_i32_0 : i32, i32
  }
  func.func @transform_20(%arg0: i32) -> (i32, i32) {
    %c0_i32 = arith.constant 0 : i32
    %c0_i32_0 = arith.constant 0 : i32
    %c0_i32_1 = arith.constant 0 : i32
    return %c0_i32, %c0_i32_0 : i32, i32
  }
}

</mosaic_0001>

<bundles_post_ra>
// kernel: imagebind_wrapper_forward.1
= control target key start
LH: loop header
LB: loop body
LE: loop exit
PB: predicated region body
PF: predicated region fallthrough
CT: control target
= control target key end

     0   :  { %s5115_s0 = inlined_call_operand.vmem [shape: bf16[8,192], index: 0, kind: input, shape index: {}]   ;;  %s5116_s1 = inlined_call_operand.vmem [shape: bf16[192,128], index: 1, kind: input, shape index: {}]   ;;  %s5117_s2 = inlined_call_operand.vmem [shape: bf16[1,128], index: 2, kind: input, shape index: {}]   ;;  %s5118_s3 = inlined_call_operand.vmem [shape: bf16[1,128], index: 3, kind: input, shape index: {}]   ;;  %s5119_s4 = inlined_call_operand.vmem [shape: bf16[5,128], index: 4, kind: input, shape index: {}]   ;;  %s5120_s5 = inlined_call_operand.vmem [shape: bf16[2,1,128], index: 5, kind: input, shape index: {}]   ;;  %s5121_s6 = inlined_call_operand.vmem [shape: bf16[2,1,128], index: 6, kind: input, shape index: {}]   ;;  %s5122_s7 = inlined_call_operand.hbm [shape: bf16[2,128,384], index: 7, kind: input, shape index: {}]   ;;  %s5123_s8 = inlined_call_operand.vmem [shape: bf16[2,1,384], index: 8, kind: input, shape index: {}]   ;;  %s5124_s9 = inlined_call_operand.hbm [shape: bf16[2,128,128], index: 9, kind: input, shape index: {}]   ;;  %s5125_s10 = inlined_call_operand.vmem [shape: bf16[2,1,128], index: 10, kind: input, shape index: {}]   ;;  %s5126_s11 = inlined_call_operand.vmem [shape: bf16[2,1,128], index: 11, kind: input, shape index: {}]   ;;  %s5127_s12 = inlined_call_operand.vmem [shape: bf16[2,1,128], index: 12, kind: input, shape index: {}]   ;;  %s5128_s13 = inlined_call_operand.vmem [shape: bf16[2,128,512], index: 13, kind: input, shape index: {}]   ;;  %s5129_s14 = inlined_call_operand.vmem [shape: bf16[2,1,512], index: 14, kind: input, shape index: {}]   ;;  %s5130_s15 = inlined_call_operand.hbm [shape: bf16[2,512,128], index: 15, kind: input, shape index: {}]   ;;  %s5131_s16 = inlined_call_operand.vmem [shape: bf16[2,1,128], index: 16, kind: input, shape index: {}]   ;;  %s5132_s17 = inlined_call_operand.vmem [shape: bf16[1,128], index: 17, kind: input, shape index: {}]   ;;  %s5133_s18 = inlined_call_operand.vmem [shape: bf16[1,128], index: 18, kind: input, shape index: {}]   ;;  %s5134_s19 = inlined_call_operand.hbm [shape: bf16[128,128], index: 19, kind: input, shape index: {}]   ;;  %s5135_s20 = inlined_call_operand.hbm [shape: bf16[2,128], index: 20, kind: output, shape index: {}]  }
   0x1   :  { %5153 = sst [smem:[#allocation19_spill]] %s5115_s0 }
   0x2   :  { %5154 = sst [smem:[#allocation20_spill]] %s5116_s1 }
   0x3   :  { %5155 = sst [smem:[#allocation21_spill]] %s5117_s2 }
   0x4   :  { %5156 = sst [smem:[#allocation22_spill]] %s5118_s3 }
   0x5   :  { %5157 = sst [smem:[#allocation23_spill]] %s5119_s4 }
   0x6   :  { %5158 = sst [smem:[#allocation24_spill]] %s5122_s7 }
   0x7   :  { %5159 = sst [smem:[#allocation25_spill]] %s5123_s8 }
   0x8   :  { %5160 = sst [smem:[#allocation26_spill]] %s5124_s9 }
   0x9   :  { %5161 = sst [smem:[#allocation27_spill]] %s5128_s13 }
   0xa   :  { %5162 = sst [smem:[#allocation28_spill]] %s5129_s14 }
   0xb   :  { %5163 = sst [smem:[#allocation29_spill]] %s5130_s15 }
   0xc   :  { %5164 = sst [smem:[#allocation30_spill]] %s5131_s16 }
   0xd   :  { %5165 = sst [smem:[#allocation31_spill]] %s5132_s17 }
   0xe   :  { %5166 = sst [smem:[#allocation32_spill]] %s5133_s18 }
   0xf   :  { %5167 = sst [smem:[#allocation33_spill]] %s5135_s20 }
  0x10   :  { %25 = vsyncpa [#allocation4], 0 }
  0x11   :  { %27 = vsyncpa [#allocation4 + $0x1], 0 }
  0x12   :  { %28 = vsyncpa [#allocation7], 0 }
  0x13   :  { %30 = vsyncpa [#allocation7 + $0x1], 0 }
  0x14   :  { %31 = vsyncpa [#allocation10], 0 }
  0x15   :  { %32 = vsyncpa [#allocation5], 0  ;;  %s4355_s1 = smov 0   ;;  %s4357_s22 = smov 0  }
  0x16   :  { %s4359_s23 = smov 0   ;;  %s4361_s24 = smov 0  }
  0x17 LB: > { %5168 = sst [smem:[#allocation16_spill]] %s4225_s23  ;;  %s4376_s2 = sadd.s32 1, %s4229_s24   ;;  %s4229_s24 = sphi %s4361_s24, %s5206_s24   ;;  %s4225_s23 = sphi %s4359_s23, %s5208_s23   ;;  %s4221_s22 = sphi %s4357_s22, %s5210_s22   ;;  %s4217_s1 = sphi %s4355_s1, %s5209_s1  }
  0x18   : > { %5169 = sst [smem:[#allocation17_spill]] %s4376_s2  ;;  %s202_s25 = sadd.s32 1, %s4225_s23 }
  0x19   : > { %s199_s3 = ssub.s32 %s4229_s24, %s4376_s2  ;;  %p209_p0 = scmp.ne.s32.totalorder %s4225_s23, %s4221_s22 }
  0x1a   : > { %p200_p1 = scmp.eq.s32.totalorder %s199_s3, 0  ;;  %p210_p2 = scmp.eq.s32.totalorder %s4229_s24, 0 }
  0x1b   : > { %p3782_p4 = scmp.lt.s32.totalorder %s4229_s24, 2  ;;  %s4389_s27 = sand.u32 1, %s4225_s23  }
  0x1c   : > { %s4385_s26 = scalar_select %p200_p1, %s4225_s23, %s202_s25  }
  0x1d   : > { %p211_p3 = por %p210_p2, %p209_p0  ;;  %s631_s28 = sand.u32 1, %s4229_s24  }
  0x1e   : > { %5170 = sst [smem:[#allocation18_spill]] %s4385_s26  ;;  %s3371_s4 = sshll.u32 %s4389_s27, 6 }
  0x1f   : > { %p4393_p5 = pnand %p3782_p4, %p211_p3  ;;  %s3529_s30 = sshll.u32 %s4229_s24, 10 }
  0x20   : > { %s5172_s9 = sld [smem:[#allocation26_spill]]  ;;  %s635_s25 = scalar_lea.vmem [#allocation6], %s3371_s4 }
  0x21   : > { %s5171_s29 = scalar_select %p4393_p5, 1, 0 }
  0x22   : > { %s642_s26 = sshll.u32 %s635_s25, 4  ;;  %s4405_s23 = scalar_lea.sflag [#allocation7], %s631_s28  ;;  %s4403_s26 = int_to_ptr.vmem [resolvable:$true] %s642_s26 }
  0x23   : > { %p4411_p7 = pneg %p4393_p5 }
  0x25   : > { %s5173_s20 = scalar_select %p4411_p7, 1, 0 }
  0x26   : > { %s4401_s3 = scalar_lea.hbm %s5172_s9, %s3529_s30  ;;  %s4044_s4 = scalar_lea.hbm %s5172_s9, 2048 }
  0x27   : > { %s4039_s2 = scalar_lea.hbm %s4401_s3, 1024  ;;  %p4045_p10 = scmp.lt.u32.totalorder %s4401_s3, %s5172_s9 }
  0x28   : > { %p4040_p6 = scmp.ne.s32.totalorder %s4401_s3, %s4039_s2  ;;  %p4046_p11 = scmp.lt.u32.totalorder %s4044_s4, %s4039_s2 }
  0x29   : > { %p4048_p13 = scmp.lt.u32.totalorder %s4039_s2, %s4401_s3 }
  0x2a   : > { %p4042_p8 = pnand %p4411_p7, %p4040_p6  ;;  %p4047_p12 = por %p4046_p11, %p4045_p10 }
  0x2c   : > { %p4043_p9 = pneg %p4042_p8  ;;  %p4049_p0 = por %p4048_p13, %p4047_p12 }
  0x2e   : > { %p4050_p1 = pnand %p4049_p0, %p4043_p9 }
  0x30   : > { %4053 = shalt.err (!%p4050_p1)
}
  0x31   : > { %s4054_s28 = scalar_lea.vmem %s4403_s26, 1024  ;;  %s4231_s30 = smov [#allocation6]  }
  0x32   : > { %p4055_p2 = scmp.ne.s32.totalorder %s4403_s26, %s4054_s28  ;;  %s4059_s0 = sshll.u32 %s4231_s30, 4  ;;  %s4060_s0 = int_to_ptr.vmem [resolvable:$false] %s4059_s0 }
  0x33   : > { %s4061_s21 = scalar_lea.vmem %s4060_s0, 2048  ;;  %p4062_p6 = scmp.lt.s32.totalorder %s4403_s26, %s4060_s0 }
  0x34   : > { %p4057_p3 = pnand %p4055_p2, %p4411_p7  ;;  %p4063_p8 = scmp.lt.s32.totalorder %s4061_s21, %s4054_s28 }
  0x36   : > { %p4058_p4 = pneg %p4057_p3  ;;  %p4064_p10 = por %p4063_p8, %p4062_p6 }
  0x38   : > { %p4065_p11 = pnand %p4064_p10, %p4058_p4 }
  0x3a   : > { %4068 = shalt.err (!%p4065_p11)
}
  0x3b   : > { %s5142_s2 = smov 64   ;;  %s5144_s4 = smov 4  }
  0x3c   : > { %3777 = dma.hbm_to_vmem [thread:$0]  (!%p4393_p5), %s4401_s3, 1024, %s4403_s26, %s4405_s23, %s5142_s2, %s5142_s2, %s5144_s4  }
  0x3d   : > { %s4439_s25 = sadd.s32 4294967295, %s4229_s24   ;;  %p215_p9 = scmp.ne.s32.totalorder %s4221_s22, %s4217_s1 }
  0x3e   : > { %p5146_p12 = scmp.eq.s32.totalorder %s4439_s25, 0  ;;  %p3367_p13 = scmp.ge.s32.totalorder %s4229_s24, 1 }
  0x3f   : > { %p544_p0 = scmp.lt.s32.totalorder %s4229_s24, 3  ;;  %s4234_s26 = smov [#allocation9]  }
  0x40   : > { %p4449_p2 = por %p5146_p12, %p215_p9  ;;  %s577_s3 = sshll.u32 %s4234_s26, 4  ;;  %s4457_s3 = int_to_ptr.vmem [resolvable:$true] %s577_s3 }
  0x41   : > { %p4453_p3 = pnand %p3367_p13, %p544_p0  ;;  %s3749_s1 = smul.u32 192, %s4389_s27 }
  0x42   : > { %s5174_s28 = scalar_select %p4449_p2, 1, 0 }
  0x43   : > { %s5175_s30 = scalar_select %p4453_p3, 1, 0 }
  0x44   : > { %p3767_p4 = pneg %p4453_p3  ;;  %s3750_s0 = smul.u32 3072, %s4229_s24 }
  0x45   : > { %s5177_s7 = sld [smem:[#allocation24_spill]]  ;;  %s607_s18 = scalar_lea.vmem [#allocation3], %s3749_s1 }
  0x46   : > { %p4465_p6 = pnand %p3767_p4, %p5146_p12  ;;  %s614_s17 = sshll.u32 %s607_s18, 4  ;;  %s4474_s17 = int_to_ptr.vmem [resolvable:$true] %s614_s17 }
  0x47   : > { %s4069_s14 = scalar_lea.hbm %s5134_s19, 1024 }
  0x48   : > { %p4070_p8 = scmp.ne.s32.totalorder %s5134_s19, %s4069_s14  ;;  %p4071_p10 = pneg %p4465_p6 }
  0x49   : > { %p4076_p13 = scmp.lt.u32.totalorder %s4069_s14, %s5134_s19 }
  0x4a   : > { %p4072_p11 = pnand %p4071_p10, %p4070_p8 }
  0x4b   : > { %s4472_s9 = scalar_lea.hbm %s5177_s7, %s3750_s0 }
  0x4c   : > { %p4073_p9 = pneg %p4072_p11 }
  0x4e   : > { %p4078_p0 = pnand %p4076_p13, %p4073_p9 }
  0x50   : > { %4081 = shalt.err (!%p4078_p0)
}
  0x51   : > { %s4082_s18 = scalar_lea.vmem %s4457_s3, 1024  ;;  %p4090_p2 = scmp.lt.s32.totalorder %s4457_s3, %s4457_s3 }
  0x52   : > { %p4083_p4 = scmp.ne.s32.totalorder %s4457_s3, %s4082_s18  ;;  %p4091_p3 = scmp.lt.s32.totalorder %s4082_s18, %s4082_s18 }
  0x54   : > { %p4085_p1 = pnand %p4083_p4, %p4071_p10  ;;  %p4092_p5 = por %p4091_p3, %p4090_p2 }
  0x56   : > { %p4086_p12 = pneg %p4085_p1 }
  0x58   : > { %p4093_p7 = pnand %p4092_p5, %p4086_p12 }
  0x5a   : > { %4096 = shalt.err (!%p4093_p7)
}
  0x5b   : > { %s5178_s8 = smov 4   ;;  %s5179_s13 = smov 64  }
  0x5c   : > { %3770 = dma.hbm_to_vmem [thread:$0]  (!%p4465_p6), %s5134_s19, 1024, %s4457_s3, [#allocation10], %s5179_s13, %s5179_s13, %s5178_s8  }
  0x5d   : > { %s3374_s1 = sshll.u32 %s4389_s27, 8  ;;  %s604_s0 = scalar_lea.sflag [#allocation4], %s4389_s27 }
  0x5e   : > { %s4097_s26 = scalar_lea.hbm %s4472_s9, 3072  ;;  %p5180_p7 = scmp.ne.s32.totalorder %s5173_s20, 0 }
  0x5f   : > { %p4098_p5 = scmp.ne.s32.totalorder %s4472_s9, %s4097_s26  ;;  %s4102_s4 = scalar_lea.hbm %s5177_s7, 6144 }
  0x60   : > { %p4103_p2 = scmp.lt.u32.totalorder %s4472_s9, %s5177_s7  ;;  %p4104_p3 = scmp.lt.u32.totalorder %s4102_s4, %s4097_s26 }
  0x61   : > { %p4100_p12 = pnand %p4098_p5, %p5180_p7  ;;  %p4106_p10 = scmp.lt.u32.totalorder %s4097_s26, %s4472_s9 }
  0x62   : > { %p4105_p8 = por %p4104_p3, %p4103_p2 }
  0x63   : > { %p4101_p1 = pneg %p4100_p12 }
  0x64   : > { %p4107_p11 = por %p4106_p10, %p4105_p8 }
  0x66   : > { %p4108_p6 = pnand %p4107_p11, %p4101_p1 }
  0x68   : > { %4111 = shalt.err (!%p4108_p6)
}
  0x69   : > { %s4112_s3 = scalar_lea.vmem %s4474_s17, 3072  ;;  %s4235_s16 = smov [#allocation3]  }
  0x6a   : > { %p4113_p9 = scmp.ne.s32.totalorder %s4474_s17, %s4112_s3  ;;  %s4117_s21 = sshll.u32 %s4235_s16, 4  ;;  %s4118_s21 = int_to_ptr.vmem [resolvable:$false] %s4117_s21 }
  0x6b   : > { %s4119_s2 = scalar_lea.vmem %s4118_s21, 6144  ;;  %p4120_p4 = scmp.lt.s32.totalorder %s4474_s17, %s4118_s21 }
  0x6c   : > { %p4115_p13 = pnand %p4113_p9, %p5180_p7  ;;  %p4121_p5 = scmp.lt.s32.totalorder %s4119_s2, %s4112_s3 }
  0x6e   : > { %p4116_p0 = pneg %p4115_p13  ;;  %p4122_p12 = por %p4121_p5, %p4120_p4 }
  0x70   : > { %p4123_p2 = pnand %p4122_p12, %p4116_p0 }
  0x72   : > { %4126 = shalt.err (!%p4123_p2)
}
  0x73   : > { %s4236_s26 = smov 192   ;;  %s4237_s4 = smov 12  }
  0x74   : > { %p5181_p1 = scmp.ne.s32.totalorder %s5171_s29, 0  ;;  %s3530_s18 = sshll.u32 %s4229_s24, 12 }
  0x75   : > { %s5182_s15 = sld [smem:[#allocation29_spill]]  ;;  %s689_s21 = scalar_lea.vmem [#allocation8], %s3374_s1 }
  0x76   : > { %3774 = dma.hbm_to_vmem [thread:$0]  (!%p5181_p1), %s4472_s9, 3072, %s4474_s17, %s604_s0, %s4236_s26, %s4236_s26, %s4237_s4  }
  0x77   : > { %s696_s2 = sshll.u32 %s689_s21, 4  ;;  %s4533_s2 = int_to_ptr.vmem [resolvable:$true] %s696_s2 }
  0x7b   : > { %s4529_s3 = scalar_lea.hbm %s5182_s15, %s3530_s18  ;;  %s4132_s24 = scalar_lea.hbm %s5182_s15, 8192 }
  0x7c   : > { %s4127_s7 = scalar_lea.hbm %s4529_s3, 4096  ;;  %p4133_p11 = scmp.lt.u32.totalorder %s4529_s3, %s5182_s15 }
  0x7d   : > { %p4128_p3 = scmp.ne.s32.totalorder %s4529_s3, %s4127_s7  ;;  %p4134_p6 = scmp.lt.u32.totalorder %s4132_s24, %s4127_s7 }
  0x7e   : > { %p4136_p13 = scmp.lt.u32.totalorder %s4127_s7, %s4529_s3 }
  0x7f   : > { %p4130_p8 = pnand %p4128_p3, %p5180_p7  ;;  %p4135_p9 = por %p4134_p6, %p4133_p11 }
  0x81   : > { %p4131_p10 = pneg %p4130_p8  ;;  %p4137_p0 = por %p4136_p13, %p4135_p9 }
  0x83   : > { %p4138_p4 = pnand %p4137_p0, %p4131_p10 }
  0x85   : > { %4141 = shalt.err (!%p4138_p4)
}
  0x86   : > { %s4142_s27 = scalar_lea.vmem %s4533_s2, 4096  ;;  %s4238_s1 = smov [#allocation8]  }
  0x87   : > { %p4143_p5 = scmp.ne.s32.totalorder %s4533_s2, %s4142_s27  ;;  %s4147_s4 = sshll.u32 %s4238_s1, 4  ;;  %s4148_s4 = int_to_ptr.vmem [resolvable:$false] %s4147_s4 }
  0x88   : > { %s4149_s18 = scalar_lea.vmem %s4148_s4, 8192  ;;  %p4150_p3 = scmp.lt.s32.totalorder %s4533_s2, %s4148_s4 }
  0x89   : > { %p4145_p12 = pnand %p4143_p5, %p5180_p7  ;;  %p4151_p8 = scmp.lt.s32.totalorder %s4149_s18, %s4142_s27 }
  0x8b   : > { %p4146_p2 = pneg %p4145_p12  ;;  %p4152_p11 = por %p4151_p8, %p4150_p3 }
  0x8d   : > { %p4153_p6 = pnand %p4152_p11, %p4146_p2 }
  0x8f   : > { %4156 = shalt.err (!%p4153_p6)
}
  0x90   : > { %3780 = dma.hbm_to_vmem [thread:$0]  (!%p5181_p1), %s4529_s3, 4096, %s4533_s2, %s4405_s23, %s5179_s13, %s5179_s13, %s5178_s8  }
  0x91   : > { %p5183_p7 = scmp.ne.s32.totalorder %s5175_s30, 0 }
  0x92   : > { %s716_s7 = sand.u32 (!%p5183_p7), 1, %s4221_s22   ;;  %p5184_p10 = scmp.ne.s32.totalorder (!%p5183_p7), %s5174_s28, 0 }
  0x93   : > { %714 = sbr.rel (%p5183_p7) target bundleno = 4930 (0x1342), region = 100  ;;  %s717_s14 = scalar_lea.sflag (!%p5183_p7), [#allocation4], %s716_s7 }
  0x94   : > { %s3751_s20 = smul.u32 (!%p5183_p7), 192, %s716_s7 }
  0x96   : > { %s4563_s16 = scalar_lea.vmem (!%p5183_p7), [#allocation3], %s3751_s20 }
  0x9a   : > { %4200 = dma.done.wait (%p5184_p10), %s717_s14, 3072  }
  0x9b   : > { %4202 = vsyncadd (%p5184_p10), %s717_s14, 4294964224  ;;  %s725_s29 = sand.u32 1, %s4439_s25   ;;  %s3378_s21 = sshll.u32 %s716_s7, 6 }
  0x9c   : > { %s726_s23 = scalar_lea.sflag [#allocation7], %s725_s29  ;;  %s4570_s8 = scalar_lea.vmem [#allocation6], %s3378_s21 }
  0x9d   : > { %4204 = dma.done.wait (%p5184_p10), %s726_s23, 5120  }
  0x9e   : > { %4206 = vsyncadd (%p5184_p10), %s726_s23, 4294962176  ;;  %s3379_s30 = sshll.u32 %s716_s7, 8  ;;  %p5185_p1 = scmp.eq.s32.totalorder %s4439_s25, 0 }
  0x9f   : > { %s4576_s13 = scalar_lea.vmem [#allocation8], %s3379_s30 }
  0xa0   : > { %4208 = dma.done.wait (%p5185_p1), [#allocation10], 1024   ;;  %p5186_p9 = pmov %p5185_p1 }
  0xa1   : > { %p835_p13 = scmp.lt.s32.totalorder %s4439_s25, 1  ;;  %s5187_s2 = sld [smem:[#allocation25_spill]] }
  0xa2   : > { %4210 = vsyncadd (%p5186_p9), [#allocation10], 4294966272  ;;  %s5188_s28 = sld [smem:[#allocation27_spill]]  ;;  %s5189_s18 = sld [smem:[#allocation28_spill]] }
  0xa3   : > { %s4584_s3 = scalar_select %p835_p13, %s4439_s25, 1 }
  0xa4   : > { %s5190_s29 = sld [smem:[#allocation30_spill]]  ;;  %p5191_p0 = scmp.ne.s32.totalorder %s4439_s25, 0 }
  0xa5   : > { %s3752_s26 = smul.u32 3, %s4584_s3  ;;  %s3531_s17 = sshll.u32 %s4584_s3, 8  ;;  %v4239_v1 = vmov (!%p5191_p0), 0   ;;  %vm980_vm0 = vcmask (!%p5191_p0), 523264   ;;  %vm1032_vm1 = vcmask (!%p5191_p0), 1040384   ;;  %v898_v24 = vlaneseq (!%p5191_p0) }
  0xa6   : > { %s3383_s27 = sshll.u32 %s4584_s3, 2  ;;  %870 = sbr.rel (%p5191_p0) target bundleno = 456 (0x1c8), region = 120  ;;  %984 = vmatprep.subr.bf16.mxu0 (!%p5191_p0), %v4239_v1  ;;  %vm1033_vm2 = vsmask.f32 (!%p5191_p0), 256  ;;  %v1035_v21 = vld [vmem:[#allocation2] sm:$0x1] (!%p5191_p0) }
  0xa7   : > { %s4610_s9 = scalar_lea.vmem %s5187_s2, %s3752_s26  ;;  %s5192_s30 = sld [smem:[#allocation20_spill]] (!%p5191_p0)  ;;  %vm1034_vm3 = vmand (!%p5191_p0), %vm1032_vm1, %vm1033_vm2  ;;  %v899_v25 = vshrl.u32 (!%p5191_p0), %v898_v24, 7  ;;  %vm1054_vm4 = vcmask (!%p5191_p0), 1042432   ;;  %vm1055_vm5 = vsmask.f32 (!%p5191_p0), 2306  ;;  %vm1068_vm7 = vcmask (!%p5191_p0), 1042434  }
  0xa8   : > { %s4616_s15 = scalar_lea.vmem %s5188_s28, %s3531_s17  ;;  %s4622_s7 = scalar_lea.vmem %s5189_s18, %s3383_s27  ;;  %vm1056_vm6 = vmand (!%p5191_p0), %vm1054_vm4, %vm1055_vm5  ;;  %vm1069_vm8 = vsmask.f32 (!%p5191_p0), 7946 }
  0xa9   : > { %s5193_s1 = sld [smem:[#allocation19_spill]] (!%p5191_p0)  ;;  %s5194_s23 = sld [smem:[#allocation22_spill]] (!%p5191_p0)  ;;  %v900_v29 = vsub.s32 (!%p5191_p0), 0, %v899_v25  ;;  %vm1070_vm9 = vmand (!%p5191_p0), %vm1068_vm7, %vm1069_vm8 }
  0xaa   : > { %s865_s21 = scalar_lea.vmem %s5190_s29, %s4584_s3  ;;  %s5195_s4 = sld [smem:[#allocation23_spill]] (!%p5191_p0) }
  0xab   : > { %s5196_s17 = sld [smem:[#allocation21_spill]] (!%p5191_p0) }
  0xad   : > { %v3834_v0 = vld [vmem:[%s5192_s30] sm:$0xff]   ;;  %v3835_v2 = vld [vmem:[%s5192_s30 + $0x8] sm:$0xff]   ;;  %v3836_v3 = vld [vmem:[%s5192_s30 + $0x10] sm:$0xff]  }
  0xae   : > { %985 = vmatpush1.bf16.msra.mxu0 %v3834_v0  ;;  %v3837_v4 = vld [vmem:[%s5192_s30 + $0x18] sm:$0xff]   ;;  %v3838_v7 = vld [vmem:[%s5192_s30 + $0x20] sm:$0xff]   ;;  %v3839_v8 = vld [vmem:[%s5192_s30 + $0x28] sm:$0xff]  }
  0xaf   : > { %986 = vmatprep.subr.bf16.mxu0 %v4239_v1  ;;  %v871_v5 = vld [vmem:[%s5193_s1] sm:$0xff]  ;;  %v3840_v9 = vld [vmem:[%s5192_s30 + $0x30] sm:$0xff]   ;;  %v3841_v10 = vld [vmem:[%s5192_s30 + $0x38] sm:$0xff]  }
  0xb0   : > { %v3386_v6 = vcombine.high %v871_v5, %v871_v5  ;;  %v3842_v11 = vld [vmem:[%s5192_s30 + $0x40] sm:$0xff]   ;;  %v3843_v12 = vld [vmem:[%s5192_s30 + $0x48] sm:$0xff]   ;;  %v3844_v13 = vld [vmem:[%s5192_s30 + $0x50] sm:$0xff]   ;;  %v3385_v15 = vcombine.low %v871_v5, %v871_v5 }
  0xb1   : > { %v3845_v14 = vld [vmem:[%s5192_s30 + $0x58] sm:$0xff]   ;;  %v1024_v16 = vld [vmem:[%s5194_s23] sm:$0x1] }
  0xb2   : > { %987 = vmatpush1.bf16.msra.mxu0 %v3835_v2  ;;  %3399 = vmatprep.mubr.msk.bf16.mxu0 %vm980_vm0, %v3386_v6  ;;  %v1026_v17 = vld [vmem:[%s5195_s4] sm:$0x1]  ;;  %v1025_v18 = vunpack.c.l.bf16 %v1024_v16 }
  0xb3   : > { %988 = vmatprep.subr.bf16.mxu0 %v4239_v1  ;;  %v1027_v19 = vunpack.c.l.bf16 %v1026_v17  ;;  %v896_v26 = vld [vmem:[%s5196_s17] sm:$0x1] }
  0xb4   : > { %v1029_v27 = vld [vmem:[%s5195_s4] sm:$0x7]  ;;  %v897_v28 = vunpack.c.l.bf16 %v896_v26 }
  0xb5   : > { %v1028_v20 = vadd.f32 %v1027_v19, %v1025_v18  ;;  %v1030_v30 = vunpack.c.l.bf16 %v1029_v27 }
  0xb6   : > { %989 = vmatpush1.bf16.msra.mxu0 %v3836_v3  ;;  %v901_v31 = vrot.slane %v897_v28, %v900_v29 }
  0xb7   : > { %990 = vmatprep.subr.bf16.mxu0 %v4239_v1  ;;  %v1031_v22 = vpack.c.bf16 %v1028_v20, %v1028_v20  ;;  %v1039_v32 = vrot.slane %v1030_v30, 1  ;;  %v1074_v33 = vrot.slane %v1030_v30, 5 }
  0xb9   : > { %v1036_v23 = vsel %vm1034_vm3, %v1031_v22, %v1035_v21  ;;  %v1064_v51 = vshll.u32 %v1031_v22, 16 }
  0xba   : > { %991 = vmatpush1.bf16.msra.mxu0 %v3837_v4  ;;  %1037 = vst [vmem:[#allocation2] sm:$0x1] %v1036_v23 }
  0xbb   : > { %992 = vmatprep.subr.bf16.mxu0 %v4239_v1  ;;  %v1066_v52 = vrot.slane %v1064_v51, 6 }
  0xbe   : > { %993 = vmatpush1.bf16.msra.mxu0 %v3838_v7 }
  0xbf   : > { %994 = vmatprep.subr.bf16.mxu0 %v4239_v1 }
  0xc1   : > { %v1057_v48 = vld [vmem:[#allocation2] sm:$0x7] }
  0xc2   : > { %995 = vmatpush1.bf16.msra.mxu0 %v3839_v8 }
  0xc3   : > { %996 = vmatprep.subr.bf16.mxu0 %v4239_v1 }
  0xc6   : > { %997 = vmatpush1.bf16.msra.mxu0 %v3840_v9 }
  0xc7   : > { %998 = vmatprep.subr.bf16.mxu0 %v4239_v1 }
  0xca   : > { %999 = vmatpush1.bf16.msra.mxu0 %v3841_v10 }
  0xcb   : > { %1000 = vmatprep.subr.bf16.mxu0 %v4239_v1 }
  0xce   : > { %1001 = vmatpush1.bf16.msra.mxu0 %v3842_v11 }
  0xcf   : > { %1002 = vmatprep.subr.bf16.mxu0 %v4239_v1 }
  0xd2   : > { %1003 = vmatpush1.bf16.msra.mxu0 %v3843_v12 }
  0xd3   : > { %1004 = vmatprep.subr.bf16.mxu0 %v4239_v1 }
  0xd6   : > { %1005 = vmatpush1.bf16.msra.mxu0 %v3844_v13 }
  0xd7   : > { %1006 = vmatprep.subr.bf16.mxu0 %v4239_v1 }
  0xda   : > { %1007 = vmatpush1.bf16.msra.mxu0 %v3845_v14 }
  0xdd   : > { %1017 = vmatmul.mubr.bf16.vlgmr.msra.gmra.mrb[0].mxu0 %v3385_v15 }
 0x1b0   : > { %v1018_v34 = vpop.f32.mrb[0].mxu0 }
 0x1b1   : > { %v1019_v35 = vadd.f32 %v1018_v34, %v901_v31  ;;  %v1020_v36 = vpop.f32.mrb[1].mxu0 }
 0x1b2   : > { %v1021_v37 = vpop.f32.mrb[2].mxu0 }
 0x1b3   : > { %v1041_v38 = vadd.f32 %v1039_v32, %v1019_v35  ;;  %v1076_v39 = vadd.f32 %v1074_v33, %v1019_v35  ;;  %v1022_v40 = vpop.f32.mrb[3].mxu0 }
 0x1b5   : > { %v3532_v41 = vpack.c.bf16 %v1041_v38, %v1041_v38  ;;  %v3534_v42 = vpack.c.bf16 %v1076_v39, %v1076_v39 }
 0x1b7   : > { %v1047_v43 = vshrl.u32 %v3532_v41, 16  ;;  %v1081_v44 = vrot.slane %v3534_v42, 7  ;;  %v1050_v46 = vshll.u32 %v3532_v41, 16 }
 0x1b9   : > { %v1049_v45 = vrot.slane %v1047_v43, 7  ;;  %v1082_v47 = vrot.slane %v1081_v44, 4  ;;  %1085 = vst [vmem:[#allocation2] sm:$0x8] %v1081_v44 }
 0x1bb   : > { %v1052_v49 = vor.u32 %v1050_v46, %v1049_v45  ;;  %1086 = vst [vmem:[#allocation2 + $0x4] sm:$0x1] %v1082_v47 }
 0x1bd   : > { %v1058_v50 = vsel %vm1056_vm6, %v1052_v49, %v1057_v48 }
 0x1be   : > { %1059 = vst [vmem:[#allocation2] sm:$0x7] %v1058_v50 }
 0x1c5   : > { %v1071_v53 = vld [vmem:[#allocation2] sm:$0x4] }
 0x1c6   : > { %v1072_v54 = vsel %vm1070_vm9, %v1066_v52, %v1071_v53 }
 0x1c7   : > { %1073 = vst [vmem:[#allocation2] sm:$0x4] %v1072_v54 }
 0x1c8 PF: > { %v1088_v55 = vld [vmem:[#allocation2 + $0x4] sm:$0x1]  ;;  %vm1093_vm10 = vcmask 1041408   ;;  %v3848_v60 = vld [vmem:[%s4563_s16 + $0x4] ss:$12 sps:$4 sm:$0xff]   ;;  %v4240_v62 = vmov 0.0   ;;  %v1119_v35 = vlaneseq  ;;  %s5197_s18 = scalar_lea.vmem %s5120_s5, %s4584_s3  ;;  %s5198_s26 = scalar_lea.vmem %s5121_s6, %s4584_s3 }
 0x1c9   : > { %v1090_v57 = vunpack.c.l.bf16 %v1088_v55  ;;  %v3850_v61 = vld [vmem:[%s4563_s16] ss:$12 sps:$4 sm:$0xff]   ;;  %3629 = vmatprep.subr.bf16.mxu1 %v4240_v62  ;;  %v3851_v63 = vld [vmem:[%s4563_s16 + $0x8] ss:$12 sps:$4 sm:$0xff]   ;;  %1324 = vmatprep.subr.bf16.mxu0 %v3848_v60  ;;  %v3854_v10 = vld [vmem:[%s4563_s16 + $0x18] ss:$12 sps:$4 sm:$0xff]   ;;  %s5199_s20 = scalar_lea.vmem %s5125_s10, %s4584_s3  ;;  %s5200_s24 = scalar_lea.vmem %s5126_s11, %s4584_s3 }
 0x1ca   : > { %v3852_v0 = vld [vmem:[%s4563_s16 + $0x1c] ss:$12 sps:$4 sm:$0xff]   ;;  %1325 = vmatpush1.bf16.msra.mxu0 %v3850_v61  ;;  %3630 = vmatpush3.bf16.msra.mxu1 %v3851_v63  ;;  %v3855_v11 = vld [vmem:[%s4563_s16 + $0x20] ss:$12 sps:$4 sm:$0xff]   ;;  %v3859_v14 = vld [vmem:[%s4563_s16 + $0x38] ss:$12 sps:$4 sm:$0xff]  }
 0x1cb   : > { %v1094_v58 = vsel %vm1093_vm10, %v1090_v57, 0.0  ;;  %1326 = vmatprep.subr.bf16.mxu0 %v3852_v0  ;;  %3631 = vmatprep.subr.bf16.mxu1 %v4240_v62  ;;  %v3856_v12 = vld [vmem:[%s4563_s16 + $0x34] ss:$12 sps:$4 sm:$0xff]   ;;  %v3858_v13 = vld [vmem:[%s4563_s16 + $0x30] ss:$12 sps:$4 sm:$0xff]   ;;  %v4241_v25 = vmov 0  }
 0x1cc   : > { %1095 = vadd.xlane.f32.xlu0 %v1094_v58  ;;  %v3860_v15 = vld [vmem:[%s4563_s16 + $0x4c] ss:$12 sps:$4 sm:$0xff]   ;;  %v3862_v16 = vld [vmem:[%s4563_s16 + $0x48] ss:$12 sps:$4 sm:$0xff]   ;;  %v3863_v17 = vld [vmem:[%s4563_s16 + $0x50] ss:$12 sps:$4 sm:$0xff]   ;;  %1356 = vmatprep.mubr.bf16.mxu0 %v4241_v25 }
 0x1cd   : > { %v3864_v18 = vld [vmem:[%s4563_s16 + $0x64] ss:$12 sps:$4 sm:$0xff]   ;;  %v3866_v19 = vld [vmem:[%s4563_s16 + $0x60] ss:$12 sps:$4 sm:$0xff]   ;;  %v3867_v20 = vld [vmem:[%s4563_s16 + $0x68] ss:$12 sps:$4 sm:$0xff]  }
 0x1ce   : > { %v1087_v56 = vld [vmem:[#allocation2] sm:$0xf]  ;;  %1327 = vmatpush1.bf16.msra.mxu0 %v3854_v10  ;;  %3632 = vmatpush3.bf16.msra.mxu1 %v3855_v11  ;;  %v3868_v21 = vld [vmem:[%s4563_s16 + $0x7c] ss:$12 sps:$4 sm:$0xff]   ;;  %v3871_v23 = vld [vmem:[%s4563_s16 + $0x80] ss:$12 sps:$4 sm:$0xff]  }
 0x1cf   : > { %v1089_v59 = vunpack.c.l.bf16 %v1087_v56  ;;  %3633 = vmatprep.subr.bf16.mxu1 %v4240_v62  ;;  %1328 = vmatprep.subr.bf16.mxu0 %v3856_v12  ;;  %v3870_v22 = vld [vmem:[%s4563_s16 + $0x78] ss:$12 sps:$4 sm:$0xff]   ;;  %v3872_v24 = vld [vmem:[%s4563_s16 + $0x94] ss:$12 sps:$4 sm:$0xff]   ;;  %vm4242_vm11 = vmmov 0   ;;  %v4729_v38 = vshrl.u32 %v1119_v35, 7 }
 0x1d0   : > { %3645 = vmatprep.mubr.msk.bf16.mxu1 %vm4242_vm11, %v4240_v62  ;;  %v3874_v26 = vld [vmem:[%s4563_s16 + $0x90] ss:$12 sps:$4 sm:$0xff]   ;;  %v3875_v27 = vld [vmem:[%s4563_s16 + $0x98] ss:$12 sps:$4 sm:$0xff]   ;;  %v3878_v29 = vld [vmem:[%s4563_s16 + $0xa8] ss:$12 sps:$4 sm:$0xff]  }
 0x1d1   : > { %1091 = vadd.xlane.f32.xlu0 %v1089_v59  ;;  %v3876_v28 = vld [vmem:[%s4563_s16 + $0xac] ss:$12 sps:$4 sm:$0xff]   ;;  %v3879_v30 = vld [vmem:[%s4563_s16 + $0xb0] ss:$12 sps:$4 sm:$0xff]   ;;  %v4737_v41 = vsub.s32 0, %v4729_v38  ;;  %v1175_v58 = vsub.s32 2, %v4729_v38  ;;  %s5201_s16 = scalar_lea.vmem %s5127_s12, %s4584_s3 }
 0x1d2   : > { %1329 = vmatpush1.bf16.msra.mxu0 %v3858_v13  ;;  %3634 = vmatpush3.bf16.msra.mxu1 %v3859_v14  ;;  %v1117_v39 = vld [vmem:[%s5197_s18] sm:$0x1]  ;;  %vm1538_vm12 = vcmask 1044480   ;;  %vm1458_vm13 = vcmask 261120   ;;  %vm1415_vm14 = vcmp.lt.s32.totalorder %v4729_v38, 5  ;;  %vm1426_vm3 = vcmp.ge.s32.totalorder %v4729_v38, 5 }
 0x1d3   : > { %3635 = vmatprep.subr.bf16.mxu1 %v4240_v62  ;;  %1330 = vmatprep.subr.bf16.mxu0 %v3860_v15  ;;  %v1118_v40 = vunpack.c.l.bf16 %v1117_v39  ;;  %v1125_v42 = vld [vmem:[%s5198_s26] sm:$0x1]  ;;  %vm1510_vm8 = vcmask 80896   ;;  %vm1514_vm9 = vcmask 74752   ;;  %s4245_s23 = smov 64   ;;  %s4246_s28 = smov 32  }
 0x1d4   : > { %v1126_v46 = vunpack.c.l.bf16 %v1125_v42  ;;  %v1166_v55 = vld [vmem:[%s4610_s9] sm:$0x7]  ;;  %s4243_s9 = smov 96   ;;  %p3515_p4 = scmp.ne.s32.totalorder %s4439_s25, 1 }
 0x1d5   : > { %v1122_v45 = vrot.slane %v1118_v40, %v4737_v41  ;;  %v1167_v56 = vunpack.c.l.bf16 %v1166_v55  ;;  %s5203_s18 = sld [smem:[#allocation31_spill]] (!%p3515_p4)  ;;  %s5204_s26 = sld [smem:[#allocation32_spill]] (!%p3515_p4) }
 0x1d6   : > { %1331 = vmatpush1.bf16.msra.mxu0 %v3862_v16  ;;  %3636 = vmatpush3.bf16.msra.mxu1 %v3863_v17  ;;  %v1130_v50 = vrot.slane %v1126_v46, %v4737_v41 }
 0x1d7   : > { %3637 = vmatprep.subr.bf16.mxu1 %v4240_v62  ;;  %1332 = vmatprep.subr.bf16.mxu0 %v3864_v18  ;;  %v1176_v61 = vrot.slane %v1167_v56, %v1175_v58 }
 0x1da   : > { %1333 = vmatpush1.bf16.msra.mxu0 %v3866_v19  ;;  %3638 = vmatpush3.bf16.msra.mxu1 %v3867_v20 }
 0x1db   : > { %1334 = vmatprep.subr.bf16.mxu0 %v3868_v21  ;;  %3639 = vmatprep.subr.bf16.mxu1 %v4240_v62 }
 0x1de   : > { %1335 = vmatpush1.bf16.msra.mxu0 %v3870_v22  ;;  %3640 = vmatpush3.bf16.msra.mxu1 %v3871_v23 }
 0x1df   : > { %1336 = vmatprep.subr.bf16.mxu0 %v3872_v24  ;;  %3641 = vmatprep.subr.bf16.mxu1 %v4240_v62  ;;  %v1412_v24 = vand.u32 127, %v1119_v35 }
 0x1e1   : > { %vm1420_vm15 = vcmp.lt.s32.totalorder %v1412_v24, 5  ;;  %vm1432_vm0 = vcmp.ge.s32.totalorder %v1412_v24, 5  ;;  %vm1433_vm1 = vcmp.lt.s32.totalorder %v1412_v24, 10 }
 0x1e2   : > { %1337 = vmatpush1.bf16.msra.mxu0 %v3874_v26  ;;  %3642 = vmatpush3.bf16.msra.mxu1 %v3875_v27  ;;  %v1410_v26 = vadd.s32 8, %v4729_v38  ;;  %vm1422_vm2 = vmand %vm1415_vm14, %vm1420_vm15  ;;  %v4244_v27 = vmov -1e+30   ;;  %vm4248_vm14 = vmmov (!%p3515_p4), 0  }
 0x1e3   : > { %1338 = vmatprep.subr.bf16.mxu0 %v3876_v28  ;;  %3643 = vmatprep.subr.bf16.mxu1 %v4240_v62  ;;  %vm1434_vm4 = vmand %vm1432_vm0, %vm1433_vm1  ;;  %v1424_v28 = vsel %vm1422_vm2, 0.0, %v4244_v27 }
 0x1e4   : > { %vm1429_vm5 = vcmp.lt.s32.totalorder %v1410_v26, 10  ;;  %vm1435_vm6 = vmand %vm1426_vm3, %vm1434_vm4 }
 0x1e5   : > { %vm1436_vm7 = vmand %vm1429_vm5, %vm1434_vm4 }
 0x1e6   : > { %1339 = vmatpush1.bf16.msra.mxu0 %v3878_v29  ;;  %3644 = vmatpush3.bf16.msra.mxu1 %v3879_v30  ;;  %v4792_v30 = vsel %vm1435_vm6, 0.0, %v1424_v28 }
 0x1e7   : > { %3655 = vmatprep.subr.bf16.mxu1 %v4240_v62  ;;  %3649 = vmatprep.subr.bf16.mxu0 %v4240_v62 }
 0x259   : > { %v1096_v1 = vpop.xlane.xlu0 %1095 }
 0x25a   : > { %v1099_v2 = vmul.f32 0.0078125, %v1096_v1 }
 0x25c   : > { %v4688_v5 = vsub.f32 %v1090_v57, %v1099_v2  ;;  %v1179_v57 = vsub.s32 4, %v4729_v38 }
 0x25e   : > { %v1092_v3 = vpop.xlane.xlu0 %1091  ;;  %v1103_v8 = vmul.f32 %v4688_v5, %v4688_v5  ;;  %v1180_v60 = vrot.slane %v1167_v56, %v1179_v57 }
 0x25f   : > { %v1098_v4 = vmul.f32 0.0078125, %v1092_v3  ;;  %v1191_v3 = vrot.slane %v1176_v61, %v4737_v41 }
 0x260   : > { %v1106_v9 = vsel %vm1093_vm10, %v1103_v8, 0.0  ;;  %v1195_v0 = vrot.slane %v1180_v60, %v4737_v41 }
 0x261   : > { %v4690_v6 = vsub.f32 %v1089_v59, %v1098_v4  ;;  %v1172_v59 = vrot.slane %v1167_v56, %v4737_v41 }
 0x263   : > { %v1102_v7 = vmul.f32 %v4690_v6, %v4690_v6  ;;  %v1187_v63 = vrot.slane %v1172_v59, %v4737_v41 }
 0x265   : > { %1104 = vadd.xlane.f32.xlu1 %v1102_v7 }
 0x269   : > { %1107 = vadd.xlane.f32.xlu1 %v1106_v9 }
 0x2f2   : > { %v1105_v31 = vpop.xlane.xlu1 %1104 }
 0x2f3   : > { %v1109_v32 = vmul.f32 0.0078125, %v1105_v31 }
 0x2f5   : > { %v1111_v33 = vadd.f32 1e-06, %v1109_v32 }
 0x2f6   : > { %v1108_v34 = vpop.xlane.xlu1 %1107 }
 0x2f7   : > { %3968 = vrsqrt.f32 %v1111_v33  ;;  %v1110_v36 = vmul.f32 0.0078125, %v1108_v34  ;;  %v4794_v34 = vsel %vm1436_vm7, 0.0, %v4244_v27 }
 0x2f9   : > { %v1112_v37 = vadd.f32 1e-06, %v1110_v36 }
 0x2fb   : > { %3970 = vrsqrt.f32 %v1112_v37 }
 0x301   : > { %v3969_v43 = vpop.eup %3968 }
 0x302   : > { %v1115_v44 = vmul.f32 %v3969_v43, %v4690_v6 }
 0x304   : > { %v1123_v49 = vmul.f32 %v1122_v45, %v1115_v44 }
 0x305   : > { %v3971_v47 = vpop.eup %3970 }
 0x306   : > { %v1116_v48 = vmul.f32 %v3971_v47, %v4688_v5  ;;  %v1131_v52 = vadd.f32 %v1130_v50, %v1123_v49 }
 0x308   : > { %v1124_v51 = vmul.f32 %v1122_v45, %v1116_v48 }
 0x30a   : > { %v1132_v53 = vadd.f32 %v1130_v50, %v1124_v51 }
 0x30c   : > { %v1133_v54 = vpack.c.bf16 %v1132_v53, %v1131_v52 }
 0x30e   : > { %1357 = vmatmul.mubr.bf16.vlgmr.msra.gmra.mrb[0].mxu0 %v1133_v54  ;;  %3646 = vmatmul.mubr.bf16.vlgmr.msra.gmra.mrb[0].mxu1 %v1133_v54 }
 0x30f   : > { %3651 = vmatprep.mubr.msk.bf16.mxu0 %vm4242_vm11, %v4240_v62  ;;  %3657 = vmatprep.mubr.msk.bf16.mxu1 %vm4242_vm11, %v4240_v62 }
 0x3e1   : > { %v1358_v1 = vpop.f32.mrb[0].mxu0  ;;  %v1401_v2 = vpop.f32.mrb[0].mxu1 }
 0x3e2   : > { %v1360_v4 = vpop.f32.mrb[1].mxu0  ;;  %v3647_v5 = vpop.f32.mrb[1].mxu1  ;;  %v1359_v8 = vadd.f32 %v1358_v1, %v1187_v63  ;;  %v1402_v9 = vadd.f32 %v1401_v2, %v1195_v0 }
 0x3e3   : > { %v1362_v6 = vpop.f32.mrb[2].mxu0  ;;  %v1404_v7 = vpop.f32.mrb[2].mxu1  ;;  %v1361_v14 = vadd.f32 %v1360_v4, %v1191_v3 }
 0x3e4   : > { %v1363_v10 = vadd.f32 %v1362_v6, %v1187_v63  ;;  %v1405_v11 = vadd.f32 %v1404_v7, %v1195_v0  ;;  %v1364_v12 = vpop.f32.mrb[3].mxu0  ;;  %v3648_v13 = vpop.f32.mrb[3].mxu1 }
 0x3e5   : > { %v1365_v15 = vadd.f32 %v1364_v12, %v1191_v3 }
 0x3e6   : > { %v4763_v16 = vpack.c.bf16 %v1363_v10, %v1359_v8  ;;  %v4765_v17 = vpack.c.bf16 %v1405_v11, %v1402_v9 }
 0x3e7   : > { %v4767_v18 = vpack.c.bf16 %v1365_v15, %v1361_v14 }
 0x3e8   : > { %1585 = vrot.lane.b32.xlu1 %v4763_v16, %s4243_s9  ;;  %v1540_v19 = vsel %vm1538_vm12, %v4765_v17, 0 }
 0x3e9   : > { %3656 = vmatpush3.bf16.msra.mxu1 %v1540_v19  ;;  %1588 = vrot.lane.b32.xlu0 %v4767_v18, %s4243_s9  ;;  %v1463_v20 = vsel %vm1458_vm13, %v4767_v18, 0 }
 0x3ea   : > { %3650 = vmatpush3.bf16.xpose.msra.mxu0 %v1463_v20  ;;  %3667 = vmatprep.subr.bf16.mxu1 %v4240_v62 }
 0x3eb   : > { %3661 = vmatprep.subr.bf16.mxu0 %v4240_v62 }
 0x3f1   : > { %3652 = vmatmul.mubr.msk.bf16.vlgmr.msra.gmra.mrb[4].mxu0 %vm1458_vm13, %v4763_v16 }
 0x3f2   : > { %3663 = vmatprep.mubr.msk.bf16.mxu0 %vm4242_vm11, %v4240_v62 }
 0x45a   : > { %v1586_v23 = vpop.permute.xlu1 %1585 }
 0x45b   : > { %v1589_v21 = vpop.permute.xlu0 %1588 }
 0x45c   : > { %v1594_v22 = vsel %vm1458_vm13, %v1589_v21, 0 }
 0x45d   : > { %3662 = vmatpush3.bf16.xpose.msra.mxu0 %v1594_v22  ;;  %v3882_v22 = vld [vmem:[%s4570_s8 + $0x10] sm:$0xff]  }
 0x45e   : > { %3673 = vmatprep.subr.bf16.mxu0 %v4240_v62 }
 0x464   : > { %3664 = vmatmul.mubr.msk.bf16.vlgmr.msra.gmra.mrb[8].mxu0 %vm1458_vm13, %v1586_v23  ;;  %v3883_v23 = vld [vmem:[%s4570_s8 + $0x18] sm:$0xff]  }
 0x465   : > { %3677 = vmatprep.mubr.msk.bf16.mxu0 %vm4242_vm11, %v4240_v62  ;;  %3674 = vmatpush3.bf16.msra.mxu0 %v3882_v22 }
 0x466   : > { %3675 = vmatprep.subr.bf16.mxu0 %v4240_v62 }
 0x469   : > { %3676 = vmatpush3.bf16.msra.mxu0 %v3883_v23 }
 0x46a   : > { %3689 = vmatprep.subr.bf16.mxu0 %v4240_v62 }
 0x4c4   : > { %v1499_v29 = vpop.f32.mrb[4].mxu0 }
 0x4c5   : > { %v1506_v31 = vmul.f32 0.17677669, %v1499_v29  ;;  %v3653_v32 = vpop.f32.mrb[5].mxu0 }
 0x4c6   : > { %v1502_v33 = vpop.f32.mrb[6].mxu0 }
 0x4c7   : > { %v1507_v35 = vmul.f32 0.17677669, %v1502_v33  ;;  %v3654_v36 = vpop.f32.mrb[7].mxu0  ;;  %v1508_v37 = vadd.f32 %v1506_v31, %v4792_v30 }
 0x4c9   : > { %v1511_v39 = vsel %vm1510_vm8, %v1508_v37, -inf  ;;  %v1509_v40 = vadd.f32 %v1507_v35, %v4794_v34  ;;  %v3880_v35 = vld [vmem:[%s4570_s8] sm:$0xff]  }
 0x4ca   : > { %1512 = vmax.xlane.f32.xlu1 %v1511_v39 }
 0x4cb   : > { %v1515_v42 = vsel %vm1514_vm9, %v1509_v40, -inf }
 0x4cc   : > { %1516 = vmax.xlane.f32.xlu0 %v1515_v42 }
 0x537   : > { %v1630_v43 = vpop.f32.mrb[8].mxu0 }
 0x538   : > { %v1637_v44 = vmul.f32 0.17677669, %v1630_v43  ;;  %v3665_v45 = vpop.f32.mrb[9].mxu0 }
 0x539   : > { %v1633_v46 = vpop.f32.mrb[10].mxu0 }
 0x53a   : > { %v1638_v47 = vmul.f32 0.17677669, %v1633_v46  ;;  %v3666_v48 = vpop.f32.mrb[11].mxu0  ;;  %v1639_v49 = vadd.f32 %v1637_v44, %v4792_v30 }
 0x53c   : > { %v1641_v50 = vsel %vm1510_vm8, %v1639_v49, -inf  ;;  %v1640_v51 = vadd.f32 %v1638_v47, %v4794_v34 }
 0x53d   : > { %1642 = vmax.xlane.f32.xlu0 %v1641_v50 }
 0x53e   : > { %v1644_v52 = vsel %vm1514_vm9, %v1640_v51, -inf }
 0x53f   : > { %1645 = vmax.xlane.f32.xlu1 %v1644_v52 }
 0x557   : > { %v1513_v53 = vpop.xlane.xlu1 %1512 }
 0x558   : > { %v1518_v54 = vsub.f32 %v1508_v37, %v1513_v53  ;;  %v3881_v37 = vld [vmem:[%s4570_s8 + $0x8] sm:$0xff]  }
 0x559   : > { %v1517_v55 = vpop.xlane.xlu0 %1516 }
 0x55a   : > { %v1520_v56 = vmul.f32 1.442695, %v1518_v54  ;;  %v1519_v59 = vsub.f32 %v1509_v40, %v1517_v55 }
 0x55c   : > { %3972 = vpow2.f32 %v1520_v56  ;;  %v1522_v60 = vmul.f32 1.442695, %v1519_v59 }
 0x55e   : > { %3974 = vpow2.f32 %v1522_v60 }
 0x566   : > { %v3973_v61 = vpop.eup %3972 }
 0x567   : > { %v1524_v63 = vsel %vm1510_vm8, %v3973_v61, 0.0 }
 0x568   : > { %v3975_v0 = vpop.eup %3974  ;;  %1525 = vadd.xlane.f32.xlu0 %v1524_v63 }
 0x569   : > { %v1527_v1 = vsel %vm1514_vm9, %v3975_v0, 0.0 }
 0x56a   : > { %1528 = vadd.xlane.f32.xlu1 %v1527_v1 }
 0x5ca   : > { %v1643_v2 = vpop.xlane.xlu0 %1642 }
 0x5cb   : > { %v1647_v3 = vsub.f32 %v1639_v49, %v1643_v2 }
 0x5cc   : > { %v1646_v4 = vpop.xlane.xlu1 %1645 }
 0x5cd   : > { %v1649_v5 = vmul.f32 1.442695, %v1647_v3  ;;  %v1648_v6 = vsub.f32 %v1640_v51, %v1646_v4 }
 0x5cf   : > { %3976 = vpow2.f32 %v1649_v5  ;;  %v1651_v7 = vmul.f32 1.442695, %v1648_v6 }
 0x5d1   : > { %3978 = vpow2.f32 %v1651_v7 }
 0x5d9   : > { %v3977_v8 = vpop.eup %3976 }
 0x5da   : > { %v1653_v9 = vsel %vm1510_vm8, %v3977_v8, 0.0 }
 0x5db   : > { %v3979_v10 = vpop.eup %3978  ;;  %1654 = vadd.xlane.f32.xlu0 %v1653_v9 }
 0x5dc   : > { %v1656_v11 = vsel %vm1514_vm9, %v3979_v10, 0.0 }
 0x5dd   : > { %1657 = vadd.xlane.f32.xlu1 %v1656_v11 }
 0x5ee   : > { %1829 = vrot.lane.b32.xlu1 %v4767_v18, %s4245_s23 }
 0x5f1   : > { %1665 = vrot.lane.b32.xlu0 %v4765_v17, %s4243_s9 }
 0x5f2   : > { %1827 = vrot.lane.b32.xlu1 %v4763_v16, %s4245_s23 }
 0x5f5   : > { %v1526_v12 = vpop.xlane.xlu0 %1525 }
 0x5f6   : > { %3980 = vrcp.f32 %v1526_v12 }
 0x5f7   : > { %v1529_v13 = vpop.xlane.xlu1 %1528 }
 0x5f8   : > { %3982 = vrcp.f32 %v1529_v13 }
 0x600   : > { %v3981_v14 = vpop.eup %3980 }
 0x601   : > { %v1532_v19 = vmul.f32 %v3981_v14, %v3973_v61 }
 0x602   : > { %v3983_v15 = vpop.eup %3982 }
 0x603   : > { %v1533_v20 = vmul.f32 %v3983_v15, %v3975_v0 }
 0x605   : > { %v1534_v21 = vpack.c.bf16 %v1533_v20, %v1532_v19 }
 0x607   : > { %3658 = vmatmul.mubr.msk.bf16.vlgmr.msra.gmra.mrb[4].mxu1 %vm1510_vm8, %v1534_v21 }
 0x608   : > { %3669 = vmatprep.mubr.msk.bf16.mxu1 %vm4242_vm11, %v4240_v62 }
 0x668   : > { %v1655_v24 = vpop.xlane.xlu0 %1654 }
 0x669   : > { %3984 = vrcp.f32 %v1655_v24 }
 0x66a   : > { %v1658_v26 = vpop.xlane.xlu1 %1657 }
 0x66b   : > { %3986 = vrcp.f32 %v1658_v26 }
 0x66c   : > { %v1666_v27 = vpop.permute.xlu0 %1665 }
 0x66d   : > { %v1671_v28 = vsel %vm1538_vm12, %v1666_v27, 0  ;;  %v3884_v27 = vld [vmem:[%s4570_s8 + $0x20] sm:$0xff]  }
 0x66e   : > { %3668 = vmatpush3.bf16.msra.mxu1 %v1671_v28  ;;  %v1830_v47 = vpop.permute.xlu1 %1829 }
 0x66f   : > { %3681 = vmatprep.subr.bf16.mxu1 %v4240_v62  ;;  %v1835_v51 = vsel %vm1458_vm13, %v1830_v47, 0 }
 0x672   : > { %v1828_v52 = vpop.permute.xlu1 %1827 }
 0x673   : > { %v3985_v29 = vpop.eup %3984 }
 0x674   : > { %v1661_v32 = vmul.f32 %v3985_v29, %v3977_v8 }
 0x675   : > { %v3987_v31 = vpop.eup %3986 }
 0x676   : > { %v1662_v33 = vmul.f32 %v3987_v31, %v3979_v10 }
 0x678   : > { %v1663_v36 = vpack.c.bf16 %v1662_v33, %v1661_v32 }
 0x67a   : > { %3670 = vmatmul.mubr.msk.bf16.vlgmr.msra.gmra.mrb[8].mxu1 %vm1510_vm8, %v1663_v36 }
 0x67b   : > { %3682 = vmatpush3.bf16.msra.mxu1 %v3880_v35  ;;  %3685 = vmatprep.mubr.msk.bf16.mxu1 %vm4242_vm11, %v4240_v62 }
 0x67c   : > { %3683 = vmatprep.subr.bf16.mxu1 %v4240_v62 }
 0x67f   : > { %3684 = vmatpush3.bf16.msra.mxu1 %v3881_v37 }
 0x680   : > { %3695 = vmatprep.subr.bf16.mxu1 %v4240_v62 }
 0x6da   : > { %v1576_v39 = vpop.f32.mrb[4].mxu1 }
 0x6db   : > { %v3659_v40 = vpop.f32.mrb[5].mxu1 }
 0x6dc   : > { %v1579_v42 = vpop.f32.mrb[6].mxu1  ;;  %v3885_v40 = vld [vmem:[%s4570_s8 + $0x28] sm:$0xff]  }
 0x6dd   : > { %v1583_v43 = vpack.c.bf16 %v1579_v42, %v1576_v39  ;;  %v3660_v44 = vpop.f32.mrb[7].mxu1 }
 0x6df   : > { %3686 = vmatmul.mubr.msk.bf16.vlgmr.msra.gmra.mrb[12].mxu1 %vm1458_vm13, %v1583_v43 }
 0x6e0   : > { %3697 = vmatprep.mubr.msk.bf16.mxu1 %vm4242_vm11, %v4240_v62 }
 0x74d   : > { %v1707_v45 = vpop.f32.mrb[8].mxu1 }
 0x74e   : > { %v3671_v46 = vpop.f32.mrb[9].mxu1 }
 0x74f   : > { %v1710_v48 = vpop.f32.mrb[10].mxu1 }
 0x750   : > { %v1714_v49 = vpack.c.bf16 %v1710_v48, %v1707_v45  ;;  %v3672_v50 = vpop.f32.mrb[11].mxu1 }
 0x752   : > { %3678 = vmatmul.mubr.msk.bf16.vlgmr.msra.gmra.mrb[12].mxu0 %vm1458_vm13, %v1714_v49 }
 0x753   : > { %3690 = vmatpush3.bf16.xpose.msra.mxu0 %v1835_v51  ;;  %3691 = vmatprep.mubr.msk.bf16.mxu0 %vm4242_vm11, %v4240_v62 }
 0x754   : > { %3701 = vmatprep.subr.bf16.mxu0 %v4240_v62 }
 0x75a   : > { %3692 = vmatmul.mubr.msk.bf16.vlgmr.msra.gmra.mrb[16].mxu0 %vm1458_vm13, %v1828_v52 }
 0x75b   : > { %3705 = vmatprep.mubr.msk.bf16.mxu0 %vm4242_vm11, %v4240_v62  ;;  %3702 = vmatpush3.bf16.msra.mxu0 %v3884_v27  ;;  %v2199_v27 = vld [vmem:[%s5199_s20] sm:$0x1] }
 0x75c   : > { %3703 = vmatprep.subr.bf16.mxu0 %v4240_v62 }
 0x75f   : > { %3704 = vmatpush3.bf16.msra.mxu0 %v3885_v40 }
 0x760   : > { %3715 = vmatprep.subr.bf16.mxu0 %v4240_v62 }
 0x7b2   : > { %v1820_v53 = vpop.f32.mrb[12].mxu1 }
 0x7b3   : > { %v3687_v54 = vpop.f32.mrb[13].mxu1 }
 0x7b4   : > { %v1823_v55 = vpop.f32.mrb[14].mxu1 }
 0x7b5   : > { %v3688_v56 = vpop.f32.mrb[15].mxu1 }
 0x825   : > { %v1764_v59 = vpop.f32.mrb[12].mxu0 }
 0x826   : > { %v4841_v60 = vadd.f32 %v1820_v53, %v1764_v59  ;;  %v3679_v61 = vpop.f32.mrb[13].mxu0 }
 0x827   : > { %v1767_v63 = vpop.f32.mrb[14].mxu0 }
 0x828   : > { %v4843_v0 = vadd.f32 %v1823_v55, %v1767_v63  ;;  %v3680_v1 = vpop.f32.mrb[15].mxu0 }
 0x82d   : > { %v1871_v2 = vpop.f32.mrb[16].mxu0 }
 0x82e   : > { %v1878_v3 = vmul.f32 0.17677669, %v1871_v2  ;;  %v3693_v4 = vpop.f32.mrb[17].mxu0 }
 0x82f   : > { %v1874_v5 = vpop.f32.mrb[18].mxu0 }
 0x830   : > { %v1879_v6 = vmul.f32 0.17677669, %v1874_v5  ;;  %v3694_v7 = vpop.f32.mrb[19].mxu0  ;;  %v1880_v8 = vadd.f32 %v1878_v3, %v4792_v30 }
 0x832   : > { %v1882_v9 = vsel %vm1510_vm8, %v1880_v8, -inf  ;;  %v1881_v10 = vadd.f32 %v1879_v6, %v4794_v34  ;;  %v3886_v6 = vld [vmem:[%s4570_s8 + $0x30] sm:$0xff]  }
 0x833   : > { %1883 = vmax.xlane.f32.xlu1 %v1882_v9 }
 0x834   : > { %v1885_v11 = vsel %vm1514_vm9, %v1881_v10, -inf }
 0x835   : > { %1886 = vmax.xlane.f32.xlu0 %v1885_v11 }
 0x844   : > { %1905 = vrot.lane.b32.xlu1 %v4765_v17, %s4245_s23 }
 0x848   : > { %2013 = vrot.lane.b32.xlu1 %v4763_v16, %s4246_s28 }
 0x8c0   : > { %v1884_v12 = vpop.xlane.xlu1 %1883 }
 0x8c1   : > { %v1888_v13 = vsub.f32 %v1880_v8, %v1884_v12 }
 0x8c2   : > { %v1887_v14 = vpop.xlane.xlu0 %1886 }
 0x8c3   : > { %v1890_v15 = vmul.f32 1.442695, %v1888_v13  ;;  %v1889_v19 = vsub.f32 %v1881_v10, %v1887_v14 }
 0x8c4   : > { %v1906_v20 = vpop.permute.xlu1 %1905 }
 0x8c5   : > { %3988 = vpow2.f32 %v1890_v15  ;;  %v1892_v21 = vmul.f32 1.442695, %v1889_v19  ;;  %v1911_v22 = vsel %vm1538_vm12, %v1906_v20, 0 }
 0x8c6   : > { %3696 = vmatpush3.bf16.msra.mxu1 %v1911_v22 }
 0x8c7   : > { %3990 = vpow2.f32 %v1892_v21  ;;  %3709 = vmatprep.subr.bf16.mxu1 %v4240_v62 }
 0x8cf   : > { %v3989_v23 = vpop.eup %3988 }
 0x8d0   : > { %v1894_v24 = vsel %vm1510_vm8, %v3989_v23, 0.0 }
 0x8d1   : > { %v3991_v26 = vpop.eup %3990  ;;  %1895 = vadd.xlane.f32.xlu0 %v1894_v24 }
 0x8d2   : > { %v1897_v16 = vsel %vm1514_vm9, %v3991_v26, 0.0 }
 0x8d5   : > { %1898 = vadd.xlane.f32.xlu0 %v1897_v16 }
 0x8eb   : > { %2015 = vrot.lane.b32.xlu0 %v4767_v18, %s4246_s28  ;;  %v2014_v18 = vpop.permute.xlu1 %2013 }
 0x95e   : > { %v1896_v28 = vpop.xlane.xlu0 %1895 }
 0x95f   : > { %3992 = vrcp.f32 %v1896_v28  ;;  %v2200_v28 = vunpack.c.l.bf16 %v2199_v27  ;;  %v3933_v27 = vld [vmem:[%s4616_s15 + $0xe8] ss:$16 sps:$4 sm:$0xff]  }
 0x962   : > { %v1899_v29 = vpop.xlane.xlu0 %1898 }
 0x963   : > { %3994 = vrcp.f32 %v1899_v29 }
 0x966   : > { %v2016_v36 = vpop.permute.xlu0 %2015 }
 0x967   : > { %v2021_v39 = vsel %vm1458_vm13, %v2016_v36, 0 }
 0x969   : > { %v3993_v31 = vpop.eup %3992 }
 0x96a   : > { %v1902_v33 = vmul.f32 %v3993_v31, %v3989_v23  ;;  %v2204_v31 = vrot.slane %v2200_v28, %v4737_v41 }
 0x96d   : > { %v3995_v32 = vpop.eup %3994 }
 0x96e   : > { %v1903_v35 = vmul.f32 %v3995_v32, %v3991_v26 }
 0x970   : > { %v1904_v37 = vpack.c.bf16 %v1903_v35, %v1902_v33 }
 0x972   : > { %3698 = vmatmul.mubr.msk.bf16.vlgmr.msra.gmra.mrb[16].mxu1 %vm1510_vm8, %v1904_v37 }
 0x973   : > { %3710 = vmatpush3.bf16.xpose.msra.mxu1 %v2021_v39  ;;  %3711 = vmatprep.mubr.msk.bf16.mxu1 %vm4242_vm11, %v4240_v62 }
 0x974   : > { %3721 = vmatprep.subr.bf16.mxu1 %v4240_v62 }
 0x97a   : > { %3712 = vmatmul.mubr.msk.bf16.vlgmr.msra.gmra.mrb[20].mxu1 %vm1458_vm13, %v2014_v18 }
 0x97b   : > { %3725 = vmatprep.mubr.msk.bf16.mxu1 %vm4242_vm11, %v4240_v62  ;;  %3722 = vmatpush3.bf16.msra.mxu1 %v3886_v6  ;;  %v3905_v6 = vld [vmem:[%s4616_s15 + $0x4c] ss:$16 sps:$4 sm:$0xff]  }
 0x97c   : > { %3723 = vmatprep.subr.bf16.mxu1 %v4240_v62 }
 0xa45   : > { %v1947_v42 = vpop.f32.mrb[16].mxu1 }
 0xa46   : > { %v3699_v43 = vpop.f32.mrb[17].mxu1 }
 0xa47   : > { %v1950_v44 = vpop.f32.mrb[18].mxu1 }
 0xa48   : > { %v1954_v45 = vpack.c.bf16 %v1950_v44, %v1947_v42  ;;  %v3700_v46 = vpop.f32.mrb[19].mxu1  ;;  %v4024_v42 = vld [vmem:[#allocation2 + $0x4] sm:$0x1] }
 0xa4a   : > { %3706 = vmatmul.mubr.msk.bf16.vlgmr.msra.gmra.mrb[20].mxu0 %vm1458_vm13, %v1954_v45  ;;  %v4025_v45 = vld [vmem:[#allocation2] sm:$0xf] }
 0xa4b   : > { %3717 = vmatprep.mubr.msk.bf16.mxu0 %vm4242_vm11, %v4240_v62  ;;  %vm3020_vm11 = vcmask (!%p3515_p4), 1040384  }
 0xa4d   : > { %v2057_v47 = vpop.f32.mrb[20].mxu1 }
 0xa4e   : > { %v2064_v48 = vmul.f32 0.17677669, %v2057_v47  ;;  %v3713_v49 = vpop.f32.mrb[21].mxu1 }
 0xa4f   : > { %v2060_v50 = vpop.f32.mrb[22].mxu1  ;;  %v3888_v49 = vld [vmem:[%s4616_s15] ss:$16 sps:$4 sm:$0xff]  }
 0xa50   : > { %v2065_v51 = vmul.f32 0.17677669, %v2060_v50  ;;  %v3714_v52 = vpop.f32.mrb[23].mxu1  ;;  %v2066_v53 = vadd.f32 %v2064_v48, %v4792_v30  ;;  %v3890_v50 = vld [vmem:[%s4616_s15 + $0x4] ss:$16 sps:$4 sm:$0xff]  }
 0xa51   : > { %v3893_v52 = vld [vmem:[%s4616_s15 + $0xc] ss:$16 sps:$4 sm:$0xff]  }
 0xa52   : > { %v2068_v54 = vsel %vm1510_vm8, %v2066_v53, -inf  ;;  %v2067_v55 = vadd.f32 %v2065_v51, %v4794_v34  ;;  %v3891_v51 = vld [vmem:[%s4616_s15 + $0x8] ss:$16 sps:$4 sm:$0xff]  }
 0xa53   : > { %2069 = vmax.xlane.f32.xlu1 %v2068_v54  ;;  %v3899_v54 = vld [vmem:[%s4616_s15 + $0x2c] ss:$16 sps:$4 sm:$0xff]  }
 0xa54   : > { %v2071_v56 = vsel %vm1514_vm9, %v2067_v55, -inf }
 0xa55   : > { %2072 = vmax.xlane.f32.xlu0 %v2071_v56  ;;  %v3897_v56 = vld [vmem:[%s4616_s15 + $0x28] ss:$16 sps:$4 sm:$0xff]  }
 0xae0   : > { %v2070_v59 = vpop.xlane.xlu1 %2069 }
 0xae1   : > { %v2074_v61 = vsub.f32 %v2066_v53, %v2070_v59  ;;  %v3896_v53 = vld [vmem:[%s4616_s15 + $0x24] ss:$16 sps:$4 sm:$0xff]  }
 0xae2   : > { %v2073_v63 = vpop.xlane.xlu0 %2072 }
 0xae3   : > { %v2076_v1 = vmul.f32 1.442695, %v2074_v61  ;;  %v2075_v2 = vsub.f32 %v2067_v55, %v2073_v63  ;;  %v3894_v55 = vld [vmem:[%s4616_s15 + $0x20] ss:$16 sps:$4 sm:$0xff]  }
 0xae5   : > { %3996 = vpow2.f32 %v2076_v1  ;;  %v2078_v3 = vmul.f32 1.442695, %v2075_v2 }
 0xae7   : > { %3998 = vpow2.f32 %v2078_v3 }
 0xaef   : > { %v3997_v4 = vpop.eup %3996 }
 0xaf0   : > { %v2080_v30 = vsel %vm1510_vm8, %v3997_v4, 0.0 }
 0xaf1   : > { %v3999_v5 = vpop.eup %3998  ;;  %2081 = vadd.xlane.f32.xlu0 %v2080_v30 }
 0xaf2   : > { %v2083_v34 = vsel %vm1514_vm9, %v3999_v5, 0.0 }
 0xaf3   : > { %2084 = vadd.xlane.f32.xlu1 %v2083_v34  ;;  %v3902_v34 = vld [vmem:[%s4616_s15 + $0x44] ss:$16 sps:$4 sm:$0xff]  }
 0xb07   : > { %2091 = vrot.lane.b32.xlu0 %v4765_v17, %s4246_s28 }
 0xb1d   : > { %v2004_v7 = vpop.f32.mrb[20].mxu0 }
 0xb1e   : > { %v2011_v8 = vadd.f32 %v2004_v7, %v4841_v60  ;;  %v3707_v9 = vpop.f32.mrb[21].mxu0  ;;  %v3900_v7 = vld [vmem:[%s4616_s15 + $0x40] ss:$16 sps:$4 sm:$0xff]  }
 0xb1f   : > { %v2007_v10 = vpop.f32.mrb[22].mxu0  ;;  %v3908_v9 = vld [vmem:[%s4616_s15 + $0x64] ss:$16 sps:$4 sm:$0xff]  }
 0xb20   : > { %v2012_v11 = vadd.f32 %v2007_v10, %v4843_v0  ;;  %v3708_v12 = vpop.f32.mrb[23].mxu0  ;;  %v3887_v0 = vld [vmem:[%s4570_s8 + $0x38] sm:$0xff]   ;;  %v3911_v10 = vld [vmem:[%s4616_s15 + $0x6c] ss:$16 sps:$4 sm:$0xff]  }
 0xb21   : > { %3724 = vmatpush3.bf16.msra.mxu1 %v3887_v0  ;;  %v3909_v12 = vld [vmem:[%s4616_s15 + $0x68] ss:$16 sps:$4 sm:$0xff]   ;;  %v3929_v0 = vld [vmem:[%s4616_s15 + $0xcc] ss:$16 sps:$4 sm:$0xff]  }
 0xb22   : > { %2534 = vmatprep.subr.bf16.mxu1 %v3893_v52 }
 0xb7e   : > { %v2082_v13 = vpop.xlane.xlu0 %2081 }
 0xb7f   : > { %4000 = vrcp.f32 %v2082_v13  ;;  %v3914_v13 = vld [vmem:[%s4616_s15 + $0x84] ss:$16 sps:$4 sm:$0xff]  }
 0xb80   : > { %v2085_v14 = vpop.xlane.xlu1 %2084 }
 0xb81   : > { %4002 = vrcp.f32 %v2085_v14  ;;  %v3917_v14 = vld [vmem:[%s4616_s15 + $0x8c] ss:$16 sps:$4 sm:$0xff]  }
 0xb82   : > { %v2092_v15 = vpop.permute.xlu0 %2091 }
 0xb83   : > { %v2097_v17 = vsel %vm1538_vm12, %v2092_v15, 0  ;;  %v3912_v15 = vld [vmem:[%s4616_s15 + $0x80] ss:$16 sps:$4 sm:$0xff]   ;;  %vm3021_vm12 = vsmask.f32 (!%p3515_p4), 256 }
 0xb84   : > { %3716 = vmatpush3.bf16.msra.mxu0 %v2097_v17  ;;  %v3915_v17 = vld [vmem:[%s4616_s15 + $0x88] ss:$16 sps:$4 sm:$0xff]  }
 0xb85   : > { %2491 = vmatprep.subr.bf16.mxu0 %v3890_v50 }
 0xb89   : > { %v4001_v19 = vpop.eup %4000 }
 0xb8a   : > { %v2088_v20 = vmul.f32 %v4001_v19, %v3997_v4  ;;  %v3920_v19 = vld [vmem:[%s4616_s15 + $0xa4] ss:$16 sps:$4 sm:$0xff]  }
 0xb8b   : > { %v4003_v62 = vpop.eup %4002 }
 0xb8c   : > { %v2089_v21 = vmul.f32 %v4003_v62, %v3999_v5  ;;  %v3923_v62 = vld [vmem:[%s4616_s15 + $0xac] ss:$16 sps:$4 sm:$0xff]  }
 0xb8e   : > { %v2090_v60 = vpack.c.bf16 %v2089_v21, %v2088_v20  ;;  %v3918_v20 = vld [vmem:[%s4616_s15 + $0xa0] ss:$16 sps:$4 sm:$0xff]   ;;  %v3921_v21 = vld [vmem:[%s4616_s15 + $0xa8] ss:$16 sps:$4 sm:$0xff]  }
 0xb90   : > { %3718 = vmatmul.mubr.msk.bf16.vlgmr.msra.gmra.mrb[24].mxu0 %vm1510_vm8, %v2090_v60  ;;  %v3926_v60 = vld [vmem:[%s4616_s15 + $0xc4] ss:$16 sps:$4 sm:$0xff]  }
 0xb91   : > { %2523 = vmatprep.mubr.bf16.mxu0 %v4241_v25  ;;  %2492 = vmatpush1.bf16.msra.mxu0 %v3888_v49 }
 0xb92   : > { %2493 = vmatprep.subr.bf16.mxu0 %v3896_v53  ;;  %v3936_v53 = vld [vmem:[%s4576_s13 + $0x40] sm:$0xff]  }
 0xb95   : > { %2494 = vmatpush1.bf16.msra.mxu0 %v3894_v55  ;;  %v3938_v55 = vld [vmem:[%s4576_s13] sm:$0xff]  }
 0xb96   : > { %2495 = vmatprep.subr.bf16.mxu0 %v3902_v34  ;;  %v3949_v34 = vld [vmem:[%s4576_s13 + $0xd8] sm:$0xff]  }
 0xb99   : > { %2496 = vmatpush1.bf16.msra.mxu0 %v3900_v7  ;;  %v3951_v7 = vld [vmem:[%s4576_s13 + $0x98] sm:$0xff]  }
 0xb9a   : > { %2497 = vmatprep.subr.bf16.mxu0 %v3908_v9  ;;  %v3953_v9 = vld [vmem:[%s4576_s13 + $0xe0] sm:$0xff]  }
 0xc63   : > { %v2133_v22 = vpop.f32.mrb[24].mxu0 }
 0xc64   : > { %v3719_v23 = vpop.f32.mrb[25].mxu0 }
 0xc65   : > { %v2136_v24 = vpop.f32.mrb[26].mxu0  ;;  %v3927_v23 = vld [vmem:[%s4616_s15 + $0xc8] ss:$16 sps:$4 sm:$0xff]  }
 0xc66   : > { %v2140_v26 = vpack.c.bf16 %v2136_v24, %v2133_v22  ;;  %v3720_v16 = vpop.f32.mrb[27].mxu0  ;;  %v3924_v22 = vld [vmem:[%s4616_s15 + $0xc0] ss:$16 sps:$4 sm:$0xff]   ;;  %v3932_v24 = vld [vmem:[%s4616_s15 + $0xe4] ss:$16 sps:$4 sm:$0xff]  }
 0xc67   : > { %v3930_v16 = vld [vmem:[%s4616_s15 + $0xe0] ss:$16 sps:$4 sm:$0xff]  }
 0xc68   : > { %3726 = vmatmul.mubr.msk.bf16.vlgmr.msra.gmra.mrb[24].mxu1 %vm1458_vm13, %v2140_v26  ;;  %v3935_v26 = vld [vmem:[%s4616_s15 + $0xec] ss:$16 sps:$4 sm:$0xff]   ;;  %vm3022_vm13 = vmand (!%p3515_p4), %vm3020_vm11, %vm3021_vm12 }
 0xc69   : > { %2566 = vmatprep.mubr.bf16.mxu1 %v4241_v25  ;;  %2535 = vmatpush1.bf16.msra.mxu1 %v3891_v51 }
 0xc6a   : > { %2536 = vmatprep.subr.bf16.mxu1 %v3899_v54  ;;  %v3937_v54 = vld [vmem:[%s4576_s13 + $0xc0] sm:$0xff]  }
 0xc6d   : > { %2537 = vmatpush1.bf16.msra.mxu1 %v3897_v56  ;;  %v3939_v56 = vld [vmem:[%s4576_s13 + $0x80] sm:$0xff]  }
 0xc6e   : > { %2538 = vmatprep.subr.bf16.mxu1 %v3905_v6  ;;  %v3950_v6 = vld [vmem:[%s4576_s13 + $0x18] sm:$0xff]  }
 0xd3b   : > { %v2190_v29 = vpop.f32.mrb[24].mxu1 }
 0xd3c   : > { %v2197_v32 = vadd.f32 %v2190_v29, %v2011_v8  ;;  %v3727_v33 = vpop.f32.mrb[25].mxu1  ;;  %v3903_v8 = vld [vmem:[%s4616_s15 + $0x48] ss:$16 sps:$4 sm:$0xff]  }
 0xd3d   : > { %v2193_v35 = vpop.f32.mrb[26].mxu1  ;;  %2539 = vmatpush1.bf16.msra.mxu1 %v3903_v8  ;;  %v3952_v8 = vld [vmem:[%s4576_s13 + $0x60] sm:$0xff]  }
 0xd3e   : > { %v2198_v36 = vadd.f32 %v2193_v35, %v2012_v11  ;;  %v3728_v37 = vpop.f32.mrb[27].mxu1  ;;  %v2205_v39 = vadd.f32 %v2204_v31, %v2197_v32  ;;  %v3906_v11 = vld [vmem:[%s4616_s15 + $0x60] ss:$16 sps:$4 sm:$0xff]   ;;  %2540 = vmatprep.subr.bf16.mxu1 %v3911_v10  ;;  %v3954_v10 = vld [vmem:[%s4576_s13 + $0x20] sm:$0xff]  }
 0xd3f   : > { %2498 = vmatpush1.bf16.msra.mxu0 %v3906_v11  ;;  %v3955_v11 = vld [vmem:[%s4576_s13 + $0xa0] sm:$0xff]  }
 0xd40   : > { %v2206_v25 = vadd.f32 %v2204_v31, %v2198_v36  ;;  %v3535_v40 = vpack.c.bf16 %v2205_v39, %v2205_v39  ;;  %2499 = vmatprep.subr.bf16.mxu0 %v3914_v13  ;;  %v2243_v36 = vld [vmem:[%s5200_s24] sm:$0x1]  ;;  %v3957_v13 = vld [vmem:[%s4576_s13 + $0xe8] sm:$0xff]  }
 0xd41   : > { %2541 = vmatpush1.bf16.msra.mxu1 %v3909_v12  ;;  %v2244_v37 = vunpack.c.l.bf16 %v2243_v36  ;;  %v2251_v39 = vld [vmem:[%s5201_s16] sm:$0x1]  ;;  %v3956_v12 = vld [vmem:[%s4576_s13 + $0x68] sm:$0xff]  }
 0xd42   : > { %v3536_v18 = vpack.c.bf16 %v2206_v25, %v2206_v25  ;;  %v4901_v46 = vadd.bf16 %v4025_v45, %v3535_v40  ;;  %2542 = vmatprep.subr.bf16.mxu1 %v3917_v14  ;;  %v3958_v14 = vld [vmem:[%s4576_s13 + $0x28] sm:$0xff]  }
 0xd43   : > { %2500 = vmatpush1.bf16.msra.mxu0 %v3912_v15  ;;  %v2248_v40 = vrot.slane %v2244_v37, %v4737_v41  ;;  %v3959_v15 = vld [vmem:[%s4576_s13 + $0xa8] sm:$0xff]  }
 0xd44   : > { %v4898_v43 = vadd.bf16 %v4024_v42, %v3536_v18  ;;  %v2217_v48 = vunpack.c.l.bf16 %v4901_v46  ;;  %2501 = vmatprep.subr.bf16.mxu0 %v3920_v19  ;;  %v2252_v42 = vunpack.c.l.bf16 %v2251_v39  ;;  %v3961_v19 = vld [vmem:[%s4576_s13 + $0xf0] sm:$0xff]  }
 0xd45   : > { %2543 = vmatpush1.bf16.msra.mxu1 %v3915_v17  ;;  %v3960_v17 = vld [vmem:[%s4576_s13 + $0x70] sm:$0xff]  }
 0xd46   : > { %v2218_v44 = vunpack.c.l.bf16 %v4898_v43  ;;  %2544 = vmatprep.subr.bf16.mxu1 %v3923_v62  ;;  %v3962_v62 = vld [vmem:[%s4576_s13 + $0x30] sm:$0xff]  }
 0xd47   : > { %2502 = vmatpush1.bf16.msra.mxu0 %v3918_v20  ;;  %v3963_v20 = vld [vmem:[%s4576_s13 + $0xb0] sm:$0xff]  }
 0xd48   : > { %v2221_v47 = vsel %vm1093_vm10, %v2218_v44, 0.0  ;;  %2503 = vmatprep.subr.bf16.mxu0 %v3926_v60  ;;  %v3965_v60 = vld [vmem:[%s4576_s13 + $0xf8] sm:$0xff]  }
 0xd49   : > { %2222 = vadd.xlane.f32.xlu1 %v2221_v47  ;;  %2545 = vmatpush1.bf16.msra.mxu1 %v3921_v21  ;;  %v3964_v21 = vld [vmem:[%s4576_s13 + $0x78] sm:$0xff]  }
 0xd4a   : > { %2546 = vmatprep.subr.bf16.mxu1 %v3929_v0  ;;  %v3966_v0 = vld [vmem:[%s4576_s13 + $0x38] sm:$0xff]  }
 0xd4b   : > { %2504 = vmatpush1.bf16.msra.mxu0 %v3924_v22  ;;  %v3967_v22 = vld [vmem:[%s4576_s13 + $0xb8] sm:$0xff]  }
 0xd4c   : > { %2505 = vmatprep.subr.bf16.mxu0 %v3932_v24 }
 0xd4d   : > { %2219 = vadd.xlane.f32.xlu1 %v2217_v48  ;;  %2547 = vmatpush1.bf16.msra.mxu1 %v3927_v23  ;;  %v2292_v23 = vld [vmem:[%s4622_s7] sm:$0xf] }
 0xd4e   : > { %2548 = vmatprep.subr.bf16.mxu1 %v3935_v26  ;;  %v2293_v24 = vunpack.c.l.bf16 %v2292_v23  ;;  %v2309_v26 = vsub.s32 6, %v4729_v38 }
 0xd4f   : > { %2506 = vmatpush1.bf16.msra.mxu0 %v3930_v16 }
 0xd50   : > { %3576 = vmatprep.subr.bf16.mxu0 %v3936_v53  ;;  %v2298_v16 = vrot.slane %v2293_v24, %v4737_v41 }
 0xd51   : > { %2549 = vmatpush1.bf16.msra.mxu1 %v3933_v27  ;;  %v2306_v27 = vrot.slane %v2293_v24, %v1179_v57 }
 0xd52   : > { %3598 = vmatprep.subr.bf16.mxu1 %v3937_v54 }
 0xdd6   : > { %v2223_v59 = vpop.xlane.xlu1 %2222 }
 0xdd7   : > { %v2225_v61 = vmul.f32 0.0078125, %v2223_v59  ;;  %v3940_v59 = vld [vmem:[%s4576_s13 + $0x48] sm:$0xff]  }
 0xdd9   : > { %v4913_v2 = vsub.f32 %v2218_v44, %v2225_v61  ;;  %v3941_v61 = vld [vmem:[%s4576_s13 + $0xc8] sm:$0xff]  }
 0xdda   : > { %v2220_v63 = vpop.xlane.xlu1 %2219 }
 0xddb   : > { %v2224_v1 = vmul.f32 0.0078125, %v2220_v63  ;;  %v2229_v30 = vmul.f32 %v4913_v2, %v4913_v2  ;;  %v3942_v63 = vld [vmem:[%s4576_s13 + $0x8] sm:$0xff]  }
 0xddd   : > { %v4915_v3 = vsub.f32 %v2217_v48, %v2224_v1  ;;  %v2232_v5 = vsel %vm1093_vm10, %v2229_v30, 0.0  ;;  %v2256_v48 = vrot.slane %v2252_v42, %v4737_v41  ;;  %v3943_v1 = vld [vmem:[%s4576_s13 + $0x88] sm:$0xff]   ;;  %v3947_v30 = vld [vmem:[%s4576_s13 + $0x90] sm:$0xff]  }
 0xddf   : > { %v2228_v4 = vmul.f32 %v4915_v3, %v4915_v3 }
 0xde1   : > { %2230 = vadd.xlane.f32.xlu1 %v2228_v4  ;;  %v3946_v4 = vld [vmem:[%s4576_s13 + $0x10] sm:$0xff]  }
 0xde5   : > { %2233 = vadd.xlane.f32.xlu1 %v2232_v5  ;;  %v3948_v5 = vld [vmem:[%s4576_s13 + $0x58] sm:$0xff]  }
 0xe6e   : > { %v2231_v28 = vpop.xlane.xlu1 %2230 }
 0xe6f   : > { %v2235_v29 = vmul.f32 0.0078125, %v2231_v28  ;;  %v2302_v28 = vrot.slane %v2293_v24, %v1175_v58 }
 0xe71   : > { %v2237_v31 = vadd.f32 1e-06, %v2235_v29  ;;  %v2310_v29 = vrot.slane %v2293_v24, %v2309_v26 }
 0xe72   : > { %v2234_v32 = vpop.xlane.xlu1 %2233 }
 0xe73   : > { %4004 = vrsqrt.f32 %v2237_v31  ;;  %v2236_v33 = vmul.f32 0.0078125, %v2234_v32  ;;  %v2318_v31 = vrot.slane %v2298_v16, %v4737_v41  ;;  %v2326_v32 = vrot.slane %v2306_v27, %v4737_v41 }
 0xe75   : > { %v2238_v35 = vadd.f32 1e-06, %v2236_v33  ;;  %v2322_v33 = vrot.slane %v2302_v28, %v4737_v41 }
 0xe77   : > { %4006 = vrsqrt.f32 %v2238_v35  ;;  %v2330_v35 = vrot.slane %v2310_v29, %v4737_v41 }
 0xe7d   : > { %v4005_v25 = vpop.eup %4004 }
 0xe7e   : > { %v2241_v18 = vmul.f32 %v4005_v25, %v4915_v3  ;;  %v3945_v3 = vld [vmem:[%s4576_s13 + $0xd0] sm:$0xff]  }
 0xe80   : > { %v2249_v47 = vmul.f32 %v2248_v40, %v2241_v18 }
 0xe81   : > { %v4007_v44 = vpop.eup %4006 }
 0xe82   : > { %v2242_v45 = vmul.f32 %v4007_v44, %v4913_v2  ;;  %v2257_v50 = vadd.f32 %v2256_v48, %v2249_v47  ;;  %v3944_v2 = vld [vmem:[%s4576_s13 + $0x50] sm:$0xff]  }
 0xe84   : > { %v2250_v49 = vmul.f32 %v2248_v40, %v2242_v45 }
 0xe86   : > { %v2258_v51 = vadd.f32 %v2256_v48, %v2250_v49 }
 0xe88   : > { %v2259_v52 = vpack.c.bf16 %v2258_v51, %v2257_v50 }
 0xe8a   : > { %2524 = vmatmul.mubr.bf16.vlgmr.msra.gmra.mrb[28].mxu0 %v2259_v52  ;;  %2567 = vmatmul.mubr.bf16.vlgmr.msra.gmra.mrb[28].mxu1 %v2259_v52 }
 0xe8b   : > { %3577 = vmatpush3.bf16.msra.mxu0 %v3938_v55  ;;  %3599 = vmatpush3.bf16.msra.mxu1 %v3939_v56 }
 0xe8c   : > { %3578 = vmatprep.subr.bf16.mxu0 %v3940_v59  ;;  %3600 = vmatprep.subr.bf16.mxu1 %v3941_v61 }
 0xe8f   : > { %3579 = vmatpush3.bf16.msra.mxu0 %v3942_v63  ;;  %3601 = vmatpush3.bf16.msra.mxu1 %v3943_v1 }
 0xe90   : > { %3580 = vmatprep.subr.bf16.mxu0 %v3944_v2  ;;  %3602 = vmatprep.subr.bf16.mxu1 %v3945_v3 }
 0xe93   : > { %3581 = vmatpush3.bf16.msra.mxu0 %v3946_v4  ;;  %3603 = vmatpush3.bf16.msra.mxu1 %v3947_v30 }
 0xe94   : > { %3582 = vmatprep.subr.bf16.mxu0 %v3948_v5  ;;  %3604 = vmatprep.subr.bf16.mxu1 %v3949_v34 }
 0xe97   : > { %3583 = vmatpush3.bf16.msra.mxu0 %v3950_v6  ;;  %3605 = vmatpush3.bf16.msra.mxu1 %v3951_v7 }
 0xe98   : > { %3584 = vmatprep.subr.bf16.mxu0 %v3952_v8  ;;  %3606 = vmatprep.subr.bf16.mxu1 %v3953_v9 }
 0xe9b   : > { %3585 = vmatpush3.bf16.msra.mxu0 %v3954_v10  ;;  %3607 = vmatpush3.bf16.msra.mxu1 %v3955_v11 }
 0xe9c   : > { %3586 = vmatprep.subr.bf16.mxu0 %v3956_v12  ;;  %3608 = vmatprep.subr.bf16.mxu1 %v3957_v13 }
 0xe9f   : > { %3587 = vmatpush3.bf16.msra.mxu0 %v3958_v14  ;;  %3609 = vmatpush3.bf16.msra.mxu1 %v3959_v15 }
 0xea0   : > { %3588 = vmatprep.subr.bf16.mxu0 %v3960_v17  ;;  %3610 = vmatprep.subr.bf16.mxu1 %v3961_v19 }
 0xea3   : > { %3589 = vmatpush3.bf16.msra.mxu0 %v3962_v62  ;;  %3611 = vmatpush3.bf16.msra.mxu1 %v3963_v20 }
 0xea4   : > { %3590 = vmatprep.subr.bf16.mxu0 %v3964_v21  ;;  %3612 = vmatprep.subr.bf16.mxu1 %v3965_v60 }
 0xea7   : > { %3591 = vmatpush3.bf16.msra.mxu0 %v3966_v0  ;;  %3613 = vmatpush3.bf16.msra.mxu1 %v3967_v22 }
 0xf5d   : > { %v2525_v36 = vpop.f32.mrb[28].mxu0  ;;  %v2568_v37 = vpop.f32.mrb[28].mxu1 }
 0xf5e   : > { %v5003_v39 = vadd.f32 %v2525_v36, %v2318_v31  ;;  %v5005_v25 = vadd.f32 %v2568_v37, %v2326_v32  ;;  %v2527_v18 = vpop.f32.mrb[29].mxu0  ;;  %v2570_v57 = vpop.f32.mrb[29].mxu1 }
 0xf5f   : > { %v5007_v40 = vadd.f32 %v2527_v18, %v2322_v33  ;;  %v5009_v38 = vadd.f32 %v2570_v57, %v2330_v35  ;;  %v2529_v58 = vpop.f32.mrb[30].mxu0  ;;  %v2572_v42 = vpop.f32.mrb[30].mxu1 }
 0xf60   : > { %v2577_v44 = vmul.f32 %v5003_v39, %v5003_v39  ;;  %v2579_v45 = vmul.f32 %v5005_v25, %v5005_v25  ;;  %v5015_v47 = vadd.f32 %v2529_v58, %v2318_v31  ;;  %v5017_v48 = vadd.f32 %v2572_v42, %v2326_v32  ;;  %v2531_v49 = vpop.f32.mrb[31].mxu0  ;;  %v2574_v50 = vpop.f32.mrb[31].mxu1 }
 0xf61   : > { %v2578_v51 = vmul.f32 %v5007_v40, %v5007_v40  ;;  %v2580_v52 = vmul.f32 %v5009_v38, %v5009_v38  ;;  %v5023_v53 = vadd.f32 %v2531_v49, %v2322_v33  ;;  %v5025_v54 = vadd.f32 %v2574_v50, %v2330_v35 }
 0xf62   : > { %v2585_v55 = vmul.f32 %v2577_v44, %v5003_v39  ;;  %v2587_v56 = vmul.f32 %v2579_v45, %v5005_v25  ;;  %v2581_v59 = vmul.f32 %v5015_v47, %v5015_v47  ;;  %v2583_v61 = vmul.f32 %v5017_v48, %v5017_v48 }
 0xf63   : > { %v2586_v63 = vmul.f32 %v2578_v51, %v5007_v40  ;;  %v2588_v1 = vmul.f32 %v2580_v52, %v5009_v38  ;;  %v2582_v2 = vmul.f32 %v5023_v53, %v5023_v53  ;;  %v2584_v3 = vmul.f32 %v5025_v54, %v5025_v54 }
 0xf64   : > { %v2593_v4 = vmul.f32 0.044715, %v2585_v55  ;;  %v2595_v30 = vmul.f32 0.044715, %v2587_v56  ;;  %v2589_v5 = vmul.f32 %v2581_v59, %v5015_v47  ;;  %v2591_v34 = vmul.f32 %v2583_v61, %v5017_v48 }
 0xf65   : > { %v2594_v6 = vmul.f32 0.044715, %v2586_v63  ;;  %v2596_v7 = vmul.f32 0.044715, %v2588_v1  ;;  %v2590_v8 = vmul.f32 %v2582_v2, %v5023_v53  ;;  %v2592_v9 = vmul.f32 %v2584_v3, %v5025_v54 }
 0xf66   : > { %v2601_v10 = vadd.f32 %v2593_v4, %v5003_v39  ;;  %v2603_v11 = vadd.f32 %v2595_v30, %v5005_v25  ;;  %v2597_v12 = vmul.f32 0.044715, %v2589_v5  ;;  %v2599_v13 = vmul.f32 0.044715, %v2591_v34 }
 0xf67   : > { %v2602_v14 = vadd.f32 %v2594_v6, %v5007_v40  ;;  %v2604_v15 = vadd.f32 %v2596_v7, %v5009_v38  ;;  %v2598_v17 = vmul.f32 0.044715, %v2590_v8  ;;  %v2600_v19 = vmul.f32 0.044715, %v2592_v9 }
 0xf68   : > { %v2609_v62 = vmul.f32 0.7978846, %v2601_v10  ;;  %v2611_v20 = vmul.f32 0.7978846, %v2603_v11  ;;  %v2605_v21 = vadd.f32 %v2597_v12, %v5015_v47  ;;  %v2607_v60 = vadd.f32 %v2599_v13, %v5017_v48 }
 0xf69   : > { %v2610_v0 = vmul.f32 0.7978846, %v2602_v14  ;;  %v2612_v22 = vmul.f32 0.7978846, %v2604_v15  ;;  %v2606_v23 = vadd.f32 %v2598_v17, %v5023_v53  ;;  %v2608_v24 = vadd.f32 %v2600_v19, %v5025_v54 }
 0xf6a   : > { %4008 = vtanh.f32 %v2609_v62  ;;  %v2613_v26 = vmul.f32 0.7978846, %v2605_v21  ;;  %v2615_v16 = vmul.f32 0.7978846, %v2607_v60 }
 0xf6b   : > { %4010 = vtanh.f32 %v2611_v20  ;;  %v2614_v27 = vmul.f32 0.7978846, %v2606_v23  ;;  %v2616_v28 = vmul.f32 0.7978846, %v2608_v24 }
 0xf6c   : > { %4012 = vtanh.f32 %v2610_v0 }
 0xf6d   : > { %4014 = vtanh.f32 %v2612_v22 }
 0xf6e   : > { %4016 = vtanh.f32 %v2613_v26 }
 0xf6f   : > { %4018 = vtanh.f32 %v2615_v16 }
 0xf70   : > { %4020 = vtanh.f32 %v2614_v27 }
 0xf71   : > { %4022 = vtanh.f32 %v2616_v28 }
 0xf74   : > { %v4009_v29 = vpop.eup %4008 }
 0xf75   : > { %v4011_v31 = vpop.eup %4010  ;;  %v2625_v32 = vadd.f32 1.0, %v4009_v29 }
 0xf76   : > { %v4013_v33 = vpop.eup %4012  ;;  %v2627_v35 = vadd.f32 1.0, %v4011_v31 }
 0xf77   : > { %v4015_v36 = vpop.eup %4014  ;;  %v2626_v37 = vadd.f32 1.0, %v4013_v33  ;;  %v2633_v42 = vmul.f32 0.5, %v2625_v32 }
 0xf78   : > { %v4017_v18 = vpop.eup %4016  ;;  %v2628_v57 = vadd.f32 1.0, %v4015_v36  ;;  %v2635_v49 = vmul.f32 0.5, %v2627_v35  ;;  %v4247_v35 = vmov (!%p3515_p4), 0.0  }
 0xf79   : > { %v4019_v58 = vpop.eup %4018  ;;  %v2629_v44 = vadd.f32 1.0, %v4017_v18  ;;  %v2634_v56 = vmul.f32 0.5, %v2626_v37  ;;  %v2641_v1 = vmul.f32 %v2633_v42, %v5003_v39  ;;  %3729 = vmatprep.subr.bf16.mxu0 (!%p3515_p4), %v4247_v35  ;;  %v4029_v42 = vld [vmem:[#allocation9 + $0x10] sm:$0xff] (!%p3515_p4)  }
 0xf7a   : > { %v4021_v45 = vpop.eup %4020  ;;  %v2631_v50 = vadd.f32 1.0, %v4019_v58  ;;  %v2636_v63 = vmul.f32 0.5, %v2628_v57  ;;  %v2643_v4 = vmul.f32 %v2635_v49, %v5005_v25  ;;  %v2717_v25 = vld [vmem:[%s865_s21] sm:$0x1]  ;;  %v4032_v49 = vld [vmem:[#allocation9 + $0x28] sm:$0xff] (!%p3515_p4)  }
 0xf7b   : > { %v4023_v51 = vpop.eup %4022  ;;  %v2637_v52 = vmul.f32 0.5, %v2629_v44  ;;  %v2630_v55 = vadd.f32 1.0, %v4021_v45  ;;  %v2642_v34 = vmul.f32 %v2634_v56, %v5007_v40  ;;  %v2718_v40 = vunpack.c.l.bf16 %v2717_v25  ;;  %v4030_v44 = vld [vmem:[#allocation9 + $0x18] sm:$0xff] (!%p3515_p4)   ;;  %v4031_v45 = vld [vmem:[#allocation9 + $0x20] sm:$0xff] (!%p3515_p4)  }
 0xf7c   : > { %v2639_v59 = vmul.f32 0.5, %v2631_v50  ;;  %v2632_v61 = vadd.f32 1.0, %v4023_v51  ;;  %v2644_v8 = vmul.f32 %v2636_v63, %v5009_v38  ;;  %v4033_v50 = vld [vmem:[#allocation9 + $0x30] sm:$0xff] (!%p3515_p4)   ;;  %v4034_v51 = vld [vmem:[#allocation9 + $0x38] sm:$0xff] (!%p3515_p4)  }
 0xf7d   : > { %v2645_v2 = vmul.f32 %v2637_v52, %v5015_v47  ;;  %v2638_v3 = vmul.f32 0.5, %v2630_v55 }
 0xf7e   : > { %v2647_v30 = vmul.f32 %v2639_v59, %v5017_v48  ;;  %v2640_v5 = vmul.f32 0.5, %v2632_v61  ;;  %v2722_v48 = vrot.slane %v2718_v40, %v4737_v41  ;;  %v3038_v59 = vld [vmem:[%s5203_s18] sm:$0x1] (!%p3515_p4) }
 0xf7f   : > { %v2646_v6 = vmul.f32 %v2638_v3, %v5023_v53  ;;  %v2649_v7 = vpack.c.bf16 %v2645_v2, %v2641_v1  ;;  %v3045_v61 = vld [vmem:[%s5204_s26] sm:$0x1] (!%p3515_p4)  ;;  %v3039_v63 = vunpack.c.l.bf16 (!%p3515_p4), %v3038_v59 }
 0xf80   : > { %v2648_v9 = vmul.f32 %v2640_v5, %v5025_v54  ;;  %v2651_v10 = vpack.c.bf16 %v2647_v30, %v2643_v4  ;;  %v3046_v1 = vunpack.c.l.bf16 (!%p3515_p4), %v3045_v61 }
 0xf81   : > { %v2650_v39 = vpack.c.bf16 %v2646_v6, %v2642_v34  ;;  %v3043_v2 = vrot.slane (!%p3515_p4), %v3039_v63, %v4737_v41 }
 0xf82   : > { %v2652_v11 = vpack.c.bf16 %v2648_v9, %v2644_v8  ;;  %v3050_v30 = vrot.slane (!%p3515_p4), %v3046_v1, %v4737_v41 }
 0xf83   : > { %2947 = vmatprep.mubr.bf16.mxu0 %v2650_v39 }
 0xf84   : > { %2988 = vmatprep.mubr.bf16.mxu1 %v2652_v11  ;;  %2948 = vmatmul.mubr.bf16.vlgmr.msra.gmra.mrb[32].mxu0 %v2649_v7 }
 0xf85   : > { %2989 = vmatmul.mubr.bf16.vlgmr.msra.gmra.mrb[32].mxu1 %v2651_v10  ;;  %3745 = vmatprep.mubr.msk.bf16.mxu0 (!%p3515_p4), %vm4248_vm14, %v4247_v35 }
0x1057   : > { %v3592_v47 = vpop.f32.mrb[32].mxu0 }
0x1058   : > { %v3614_v53 = vpop.f32.mrb[32].mxu1  ;;  %v3593_v38 = vpop.f32.mrb[33].mxu0 }
0x1059   : > { %v3594_v12 = vadd.f32 %v3593_v38, %v3592_v47  ;;  %v3615_v54 = vpop.f32.mrb[33].mxu1  ;;  %v3595_v13 = vpop.f32.mrb[34].mxu0 }
0x105a   : > { %v3616_v14 = vadd.f32 %v3615_v54, %v3614_v53  ;;  %v3617_v15 = vpop.f32.mrb[34].mxu1  ;;  %v3596_v17 = vpop.f32.mrb[35].mxu0 }
0x105b   : > { %v2950_v19 = vadd.f32 %v3594_v12, %v2722_v48  ;;  %v3597_v62 = vadd.f32 %v3596_v17, %v3595_v13  ;;  %v3618_v20 = vpop.f32.mrb[35].mxu1 }
0x105c   : > { %v3619_v21 = vadd.f32 %v3618_v20, %v3617_v15 }
0x105d   : > { %v2991_v60 = vadd.f32 %v3616_v14, %v2950_v19  ;;  %v2953_v0 = vadd.f32 %v3597_v62, %v2722_v48 }
0x105f   : > { %v3537_v22 = vpack.c.bf16 %v2991_v60, %v2991_v60  ;;  %v2994_v23 = vadd.f32 %v3619_v21, %v2953_v0  ;;  %3012 = sbr.rel (%p3515_p4) target bundleno = 4899 (0x1323), region = 124 }
0x1061   : > { %v3005_v24 = vadd.bf16 %v3537_v22, %v4901_v46  ;;  %v3538_v26 = vpack.c.bf16 %v2994_v23, %v2994_v23  ;;  %v4027_v46 = vld [vmem:[#allocation9] sm:$0xff] (!%p3515_p4)  }
0x1062   : > { %3730 = vmatpush3.bf16.msra.mxu0 (!%p3515_p4), %v4027_v46 }
0x1063   : > { %3007 = vst [vmem:[#allocation2] sm:$0xf] %v3005_v24  ;;  %v3006_v16 = vadd.bf16 %v3538_v26, %v4898_v43  ;;  %v4028_v43 = vld [vmem:[#allocation9 + $0x8] sm:$0xff] (!%p3515_p4)   ;;  %3731 = vmatprep.subr.bf16.mxu0 (!%p3515_p4), %v4247_v35 }
0x1065   : > { %3008 = vst [vmem:[#allocation2 + $0x4] sm:$0x1] %v3006_v16 }
0x1066   : > { %3732 = vmatpush3.bf16.msra.mxu0 %v4028_v43 }
0x1067   : > { %3733 = vmatprep.subr.bf16.mxu0 %v4247_v35 }
0x106a   : > { %v3013_v27 = vld [vmem:[#allocation2] sm:$0x1]  ;;  %3734 = vmatpush3.bf16.msra.mxu0 %v4029_v42 }
0x106b   : > { %v4026_v28 = vld [vmem:[#allocation2] ss:$0 sps:$4 sm:$0x44]   ;;  %3735 = vmatprep.subr.bf16.mxu0 %v4247_v35 }
0x106c   : > { %v3018_v29 = vrot.slane %v4026_v28, 2 }
0x106e   : > { %v3023_v31 = vsel %vm3022_vm13, %v3013_v27, %v3018_v29  ;;  %3736 = vmatpush3.bf16.msra.mxu0 %v4030_v44 }
0x106f   : > { %v3024_v32 = vunpack.c.l.bf16 %v3023_v31  ;;  %3737 = vmatprep.subr.bf16.mxu0 %v4247_v35 }
0x1071   : > { %v3025_v33 = vsel %vm1093_vm10, %v3024_v32, 0.0 }
0x1072   : > { %3026 = vadd.xlane.f32.xlu0 %v3025_v33  ;;  %3738 = vmatpush3.bf16.msra.mxu0 %v4031_v45 }
0x1073   : > { %3739 = vmatprep.subr.bf16.mxu0 %v4247_v35 }
0x1076   : > { %3740 = vmatpush3.bf16.msra.mxu0 %v4032_v49 }
0x1077   : > { %3741 = vmatprep.subr.bf16.mxu0 %v4247_v35 }
0x107a   : > { %3742 = vmatpush3.bf16.msra.mxu0 %v4033_v50 }
0x107b   : > { %3743 = vmatprep.subr.bf16.mxu0 %v4247_v35 }
0x107e   : > { %3744 = vmatpush3.bf16.msra.mxu0 %v4034_v51 }
0x10ff   : > { %v3027_v36 = vpop.xlane.xlu0 %3026 }
0x1100   : > { %v3028_v37 = vmul.f32 0.0078125, %v3027_v36 }
0x1102   : > { %v3029_v18 = vsub.f32 %v3024_v32, %v3028_v37 }
0x1104   : > { %v3030_v57 = vmul.f32 %v3029_v18, %v3029_v18 }
0x1106   : > { %v3031_v58 = vsel %vm1093_vm10, %v3030_v57, 0.0 }
0x1107   : > { %3032 = vadd.xlane.f32.xlu0 %v3031_v58 }
0x1194   : > { %v3033_v52 = vpop.xlane.xlu0 %3032 }
0x1195   : > { %v3034_v55 = vmul.f32 0.0078125, %v3033_v52 }
0x1197   : > { %v3035_v56 = vadd.f32 1e-06, %v3034_v55 }
0x1199   : > { %4035 = vrsqrt.f32 %v3035_v56 }
0x11a3   : > { %v4036_v3 = vpop.eup %4035 }
0x11a4   : > { %v3037_v4 = vmul.f32 %v4036_v3, %v3029_v18 }
0x11a6   : > { %v3044_v5 = vmul.f32 %v3043_v2, %v3037_v4 }
0x11a8   : > { %v3051_v34 = vadd.f32 %v3050_v30, %v3044_v5 }
0x11aa   : > { %v3052_v6 = vpack.c.bf16 %v3051_v34, %v3051_v34 }
0x11ac   : > { %3746 = vmatmul.mubr.bf16.vlgmr.msra.gmra.mrb[0].mxu0 %v3052_v6 }
0x127f   : > { %v3151_v7 = vpop.f32.mrb[0].mxu0 }
0x1280   : > { %v3747_v8 = vpop.f32.mrb[1].mxu0  ;;  %v3157_v9 = vmul.f32 %v3151_v7, %v3151_v7 }
0x1281   : > { %v3154_v10 = vpop.f32.mrb[2].mxu0 }
0x1282   : > { %v3748_v39 = vpop.f32.mrb[3].mxu0  ;;  %v3158_v11 = vsel %vm1093_vm10, %v3157_v9, 0.0 }
0x1283   : > { %3159 = vadd.xlane.f32.xlu1 %v3158_v11 }
0x1310   : > { %v3160_v25 = vpop.xlane.xlu1 %3159 }
0x1311   : > { %v3161_v40 = vmax.f32 %v3160_v25, 1e-24 }
0x1313   : > { %4037 = vrsqrt.f32 %v3161_v40 }
0x131d   : > { %v4038_v47 = vpop.eup %4037 }
0x131e   : > { %v3163_v48 = vmul.f32 %v4038_v47, %v3151_v7 }
0x1320   : > { %v3164_v53 = vpack.c.bf16 %v3163_v48, %v3163_v48 }
0x1322   : > { %3165 = vst [vmem:[#allocation11] sm:$0x1] %v3164_v53 }
0x1323 PF: > { %p3784_p5 = scmp.eq.s32.totalorder %s4439_s25, 1  ;;  %s4249_s9 = smov [#allocation11]  }
0x1324   : > { %s3173_s23 = sshll.u32 %s4249_s9, 4  ;;  %s3174_s23 = int_to_ptr.vmem [resolvable:$true] %s3173_s23 }
0x1325   : > { %s4157_s28 = scalar_lea.vmem %s3174_s23, 16  ;;  %s4163_s0 = scalar_lea.vmem %s3174_s23, 32 }
0x1326   : > { %p4158_p12 = scmp.ne.s32.totalorder %s3174_s23, %s4157_s28  ;;  %p4164_p8 = scmp.lt.s32.totalorder %s3174_s23, %s3174_s23 }
0x1327   : > { %p4165_p11 = scmp.lt.s32.totalorder %s4163_s0, %s4157_s28 }
0x1328   : > { %p4159_p2 = pnand %p4158_p12, %p3784_p5 }
0x1329   : > { %p4166_p6 = por %p4165_p11, %p4164_p8 }
0x132a   : > { %p4160_p3 = pneg %p4159_p2 }
0x132c   : > { %p4167_p7 = pnand %p4166_p6, %p4160_p3 }
0x132e   : > { %4170 = shalt.err (!%p4167_p7)
}
0x132f   : > { %s5205_s8 = sld [smem:[#allocation33_spill]] }
0x1335   : > { %s4171_s17 = scalar_lea.hbm %s5205_s8, 16 }
0x1336   : > { %p4172_p10 = scmp.ne.s32.totalorder %s5205_s8, %s4171_s17  ;;  %p4177_p13 = scmp.lt.u32.totalorder %s4171_s17, %s5205_s8 }
0x1338   : > { %p4173_p1 = pnand %p4172_p10, %p3784_p5 }
0x133a   : > { %p4174_p9 = pneg %p4173_p1 }
0x133c   : > { %p4179_p0 = pnand %p4177_p13, %p4174_p9 }
0x133e   : > { %4182 = shalt.err (!%p4179_p0)
}
0x133f   : > { %3764 = dma.vmem_to_hbm [thread:$0]  (%p3784_p5), %s3174_s23, 16, %s5205_s8, [#allocation5]  }
0x1340   : > { %4212 = dma.done.wait (%p3784_p5), [#allocation5], 16  }
0x1341   : > { %4214 = vsyncadd (%p3784_p5), [#allocation5], 4294967280 }
0x1342 PF: > { %s5206_s24 = sld [smem:[#allocation17_spill]]  ;;  %s5207_s3 = sld [smem:[#allocation16_spill]] }
0x1343   : > { %s5208_s23 = sld [smem:[#allocation18_spill]]  ;;  %s5209_s1 = smov %s4221_s22 }
0x1348   : > { %p35_p4 = scmp.ge.s32.totalorder %s5206_s24, 4   ;;  %s5210_s22 = smov %s5207_s3 }
0x134a   :  { %37 = sbr.rel (!%p35_p4) target bundleno = 23 (0x17), region = 200 }
0x1351   :  { %3186 = vsyncpa [#allocation4], 1 }
0x1352   :  { %3188 = vsyncpa [#allocation4 + $0x1], 1 }
0x1353   :  { %3189 = vsyncpa [#allocation7], 1 }
0x1354   :  { %3191 = vsyncpa [#allocation7 + $0x1], 1 }
0x1355   :  { %3192 = vsyncpa [#allocation10], 1 }
0x1356   :  { %3193 = vsyncpa [#allocation5], 1 }
0x1357   :  { %3195 = vsyncpa [#allocation5 + $0x1], 1 }

</bundles_post_ra>
